<compile_context>
chip_gen: v7x
topology: tpu7x:2x2x1
jax: 0.10.0
libtpu: 0.0.40
codegen_flags: <defaults>
</compile_context>

<pallas_src>
import math

import jax
import jax.numpy as jnp
from jax.experimental import pallas as pl
from jax.experimental.pallas import tpu as pltpu


# -----------------------------------------------------------------------------
# Pallas kernel: dual 3x3 conv (9 accumulating MXU matmuls/row) + gate + blend
# -----------------------------------------------------------------------------
def deconv2_kernel(xa_ref, xb_ref, w_ref, b_ref, o_ref):
    # xa_ref: (1, TILE_H, C, W+2) f32  padded rows [t*TILE_H, t*TILE_H+TILE_H)
    # xb_ref: (1, 2,      C, W+2) f32  2-row bottom halo
    # w_ref : (2C, 9C)   mm_dtype     rows = [conv1 out-ch | conv2 out-ch],
    #                                  cols = (kh*3+kw)*C + ci
    # b_ref : (C, 1)     f32          shared bias (both branches use b_sum)
    # o_ref : (1, TILE_H, C, W)       f32 output rows of this tile
    _, tile_h, c, wp2 = xa_ref.shape
    w = wp2 - 2
    mm_dtype = w_ref.dtype

    bias = b_ref[...]                                        # (C, 1), hoisted
    # Hoist the 9 weight taps (each (2C, C)) out of all loops.
    w_taps = [w_ref[:, t * c:(t + 1) * c] for t in range(9)]

    # Load each padded input row once and cast the matmul operand once.
    # (body rows come from xa, the 2 halo rows from xb -- no stitch copy.)
    rows_mm = []
    for i in range(tile_h + 2):
        src = xa_ref[0, i] if i < tile_h else xb_ref[0, i - tile_h]
        rows_mm.append(src.astype(mm_dtype))                 # (C, W+2)

    for r in range(tile_h):
        # acc[o, j] = sum_{kh,kw,ci} W[o, (kh*3+kw)*C+ci] * x_pad[r+kh, ci, j+kw]
        acc = None
        for kh in range(3):
            row = rows_mm[r + kh]                            # (C, W+2)
            for kw in range(3):
                part = jnp.dot(w_taps[kh * 3 + kw],          # (2C, C)
                               row[:, kw:kw + w],            # (C, W)
                               preferred_element_type=jnp.float32)
                acc = part if acc is None else acc + part    # (2C, W) in vregs

        res1 = acc[:c] + bias                                # (C, W)
        res2 = acc[c:] + bias
        gate = jax.nn.sigmoid(res1 + res2)

        # residual / skip path: exact f32 read of the unpadded input row
        if r + 1 < tile_h:
            xres = xa_ref[0, r + 1, :, 1:1 + w]              # (C, W) f32
        else:
            xres = xb_ref[0, r + 1 - tile_h, :, 1:1 + w]

        # x + a*res1 + (1-a)*res2  ==  x + res2 + a*(res1 - res2)
        o_ref[0, r] = (xres + res2 + gate * (res1 - res2)).astype(o_ref.dtype)


# -----------------------------------------------------------------------------
# Parameter construction (deterministic, mimics PyTorch conv layer shapes)
# -----------------------------------------------------------------------------
def init_params(key, dim):
    ks = jax.random.split(key, 12)

    def u(k, shape, fan_in):
        bound = 1.0 / math.sqrt(fan_in)
        return jax.random.uniform(k, shape, jnp.float32, -bound, bound)

    return dict(
        w_cd=u(ks[0], (dim, dim, 3, 3), dim * 9), b_cd=u(ks[1], (dim,), dim * 9),
        w_hd=u(ks[2], (dim, dim, 3),    dim * 3), b_hd=u(ks[3], (dim,), dim * 3),
        w_vd=u(ks[4], (dim, dim, 3),    dim * 3), b_vd=u(ks[5], (dim,), dim * 3),
        w_ad=u(ks[6], (dim, dim, 3, 3), dim * 9), b_ad=u(ks[7], (dim,), dim * 9),
        w5=u(ks[8], (dim, dim, 3, 3),   dim * 9), b5=u(ks[9], (dim,), dim * 9),
        wp=u(ks[10], (dim, dim * 5, 1, 1), dim * 5), bp=u(ks[11], (dim,), dim * 5),
    )


def derive_weights(params, theta=1.0):
    """DEConv_2 weight re-parameterization (plain JAX glue, matches PyTorch)."""
    dim = params["w_cd"].shape[0]

    # Conv2d_cd
    wf = params["w_cd"].reshape(dim, dim, 9)
    w_cd = wf.at[:, :, 4].set(wf[:, :, 4] - wf.sum(-1)).reshape(dim, dim, 3, 3)

    # Conv2d_hd
    whd = jnp.zeros((dim, dim, 9), jnp.float32)
    whd = whd.at[:, :, jnp.array([0, 3, 6])].set(params["w_hd"])
    whd = whd.at[:, :, jnp.array([2, 5, 8])].set(-params["w_hd"])
    w_hd = whd.reshape(dim, dim, 3, 3)

    # Conv2d_vd
    wvd = jnp.zeros((dim, dim, 9), jnp.float32)
    wvd = wvd.at[:, :, 0:3].set(params["w_vd"])
    wvd = wvd.at[:, :, 6:9].set(-params["w_vd"])
    w_vd = wvd.reshape(dim, dim, 3, 3)

    # Conv2d_ad
    wad = params["w_ad"].reshape(dim, dim, 9)
    perm = jnp.array([3, 0, 1, 6, 4, 2, 7, 8, 5])
    w_ad = (wad - theta * wad[:, :, perm]).reshape(dim, dim, 3, 3)

    w5 = params["w5"]

    w_sum = w_cd + w_hd + w_vd + w_ad + w5                     # (dim, dim, 3, 3)
    b_sum = (params["b_cd"] + params["b_hd"] + params["b_vd"]
             + params["b_ad"] + params["b5"])                  # (dim,)

    # 1x1 conv applied to the concatenated WEIGHT tensor, exactly like the
    # PyTorch module (self.conv1(w2)): its bias bp is baked into every spatial
    # tap of w2, per input channel of the res2 conv.
    wcat = jnp.concatenate([w_sum, w_hd, w_vd, w_ad, w5], axis=1)  # (dim, 5dim, 3, 3)
    wp = params["wp"][:, :, 0, 0]                                  # (dim, 5dim)
    w2 = jnp.einsum("ck,okij->ocij", wp, wcat) + params["bp"][None, :, None, None]

    return w_sum, w2, b_sum


# -----------------------------------------------------------------------------
# VMEM budgeting helper ((8,128)-tile padded footprint of a pipelined block)
# -----------------------------------------------------------------------------
def _round_up(v, m):
    return (v + m - 1) // m * m


def _block_vmem_bytes(shape, itemsize):
    dims = list(shape)
    if len(dims) >= 1:
        dims[-1] = _round_up(dims[-1], 128)
    if len(dims) >= 2:
        dims[-2] = _round_up(dims[-2], 8)
    sz = itemsize
    for d in dims:
        sz *= d
    return sz


# -----------------------------------------------------------------------------
# Wrapper: NCHW in / NCHW out, Pallas kernel inside
# -----------------------------------------------------------------------------
def deconv2_forward(x_nchw, params, *, tile_h=8, mm_dtype=jnp.bfloat16):
    w1, w2, b = derive_weights(params)           # (O,I,3,3), (O,I,3,3), (O,)
    c = w1.shape[0]
    n, cc, h, w = x_nchw.shape
    assert cc == c

    if tile_h % 2:                               # 2-row halo block indexing
        tile_h += 1
    # Pad H up to a multiple of tile_h (no whole-image fallback).
    h_tiles = -(-h // tile_h)
    hp = h_tiles * tile_h

    # Fused weight slab (2C, 9C): rows = [conv1 out-ch | conv2 out-ch],
    # cols = (kh*3 + kw)*C + ci.  Weights are the matmul LHS so the spatial
    # width lands on the MXU N / lane axis.
    def to_slab(wt):                             # (O, I, 3, 3) -> (O, 9*I)
        return jnp.transpose(wt, (0, 2, 3, 1)).reshape(c, 9 * c)

    w_slab = jnp.concatenate([to_slab(w1), to_slab(w2)], axis=0).astype(mm_dtype)
    b_arr = b.reshape(c, 1).astype(jnp.float32)

    # NCHW -> (N, H, C, W) channel-major rows (lane dim = W), then the 1-px
    # spatial halo pad plus bottom padding up to the tile multiple.  Kept f32
    # so the residual / skip path read in-kernel is exact.
    x_nhcw = jnp.transpose(x_nchw, (0, 2, 1, 3)).astype(jnp.float32)
    xp = jnp.pad(x_nhcw, ((0, 0), (1, 1 + (hp - h)), (0, 0), (1, 1)))

    halo_blk = tile_h // 2                       # block-index scale, 2-row halo
    mm_bytes = jnp.dtype(mm_dtype).itemsize

    # Explicit scoped-VMEM budget: double-buffered in/out blocks + weights,
    # with generous headroom, capped below v7x's 64 MiB physical VMEM.
    vmem_need = (2 * _block_vmem_bytes((1, tile_h, c, w + 2), 4)
                 + 2 * _block_vmem_bytes((1, 2, c, w + 2), 4)
                 + 2 * _block_vmem_bytes((1, tile_h, c, w), 4)
                 + 2 * _block_vmem_bytes((2 * c, 9 * c), mm_bytes)
                 + 2 * _block_vmem_bytes((c, 1), 4))
    vmem_limit = int(min(max(2 * vmem_need + (8 << 20), 16 << 20), 64 << 20))

    cost = pl.CostEstimate(
        flops=2 * n * hp * w * (2 * c) * (9 * c),
        transcendentals=n * hp * w * c,
        bytes_accessed=int(xp.size * 4 + w_slab.size * mm_bytes
                           + b_arr.size * 4 + n * hp * c * w * 4))

    out_nhcw = pl.pallas_call(
        deconv2_kernel,
        out_shape=jax.ShapeDtypeStruct((n, hp, c, w), jnp.float32),
        grid=(n, hp // tile_h),
        in_specs=[
            # row-tile body: padded rows [t*TILE_H, t*TILE_H + TILE_H)
            pl.BlockSpec((1, tile_h, c, w + 2), lambda bi, ti: (bi, ti, 0, 0)),
            # 2-row bottom halo: padded rows [(t+1)*TILE_H, (t+1)*TILE_H + 2)
            pl.BlockSpec((1, 2, c, w + 2),
                         lambda bi, ti: (bi, (ti + 1) * halo_blk, 0, 0)),
            pl.BlockSpec((2 * c, 9 * c), lambda bi, ti: (0, 0)),   # fused weights
            pl.BlockSpec((c, 1), lambda bi, ti: (0, 0)),           # shared bias
        ],
        out_specs=pl.BlockSpec((1, tile_h, c, w), lambda bi, ti: (bi, ti, 0, 0)),
        compiler_params=pltpu.CompilerParams(
            dimension_semantics=("parallel", "parallel"),
            vmem_limit_bytes=vmem_limit),
        cost_estimate=cost,
    )(xp, xp, w_slab, b_arr)
    # TODO(synk): if input DMA becomes exposed at real sizes, add
    # pipeline_mode=pl.Buffered(3) on the row-tile input spec.

    out_nhcw = out_nhcw[:, :h] if hp != h else out_nhcw
    return jnp.transpose(out_nhcw, (0, 2, 1, 3))               # -> NCHW


# -----------------------------------------------------------------------------
# Pure-JAX reference (for correctness check)
# -----------------------------------------------------------------------------
def reference_forward(x_nchw, params):
    w1, w2, b = derive_weights(params)

    def conv(x, w):
        return jax.lax.conv_general_dilated(
            x, w, window_strides=(1, 1), padding=((1, 1), (1, 1)),
            dimension_numbers=("NCHW", "OIHW", "NCHW"))

    res1 = conv(x_nchw, w1) + b[None, :, None, None]
    res2 = conv(x_nchw, w2) + b[None, :, None, None]
    a = jax.nn.sigmoid(res1 + res2)
    return x_nchw + a * res1 + (1.0 - a) * res2


if __name__ == "__main__":
    key = jax.random.PRNGKey(0)
    kx, kp = jax.random.split(key)

    dim = 4
    n, h, w = 2, 16, 16
    x = jax.random.normal(kx, (n, dim, h, w), jnp.float32)   # NCHW like PyTorch
    params = init_params(kp, dim)

    ref = reference_forward(x, params)

    # Exact-parity path: f32 matmul operands, tight tolerance.
    out_f32 = jax.block_until_ready(
        deconv2_forward(x, params, mm_dtype=jnp.float32))
    assert out_f32.shape == (n, dim, h, w)
    assert jnp.allclose(out_f32, ref, atol=1e-3, rtol=1e-3), "f32 path mismatch"

    # bf16 matmul-operand path (f32 accumulation, f32 residual/epilogue);
    # tolerance covers the expected bf16 operand-rounding envelope.
    out_bf16 = jax.block_until_ready(
        deconv2_forward(x, params, mm_dtype=jnp.bfloat16))
    assert out_bf16.shape == (n, dim, h, w)
    assert jnp.allclose(out_bf16, ref, atol=1e-1, rtol=1e-1), "bf16 path mismatch"

    print("KERNEL_OK")
</pallas_src>

<mosaic_0001>
module attributes {stable_mosaic.version = 11 : i64} {
  func.func @deconv2_kernel(%arg0: i32, %arg1: i32, %arg2: memref<1x8x4x18xf32, #tpu.memory_space<vmem>>, %arg3: memref<1x2x4x18xf32, #tpu.memory_space<vmem>>, %arg4: memref<8x36xf32, #tpu.memory_space<vmem>>, %arg5: memref<4x1xf32, #tpu.memory_space<vmem>>, %arg6: memref<1x8x4x16xf32, #tpu.memory_space<vmem>>) attributes {dimension_semantics = [#tpu.dimension_semantics<parallel>, #tpu.dimension_semantics<parallel>], iteration_bounds = array<i64: 2, 2>, scalar_prefetch = 0 : i64, scratch_operands = 0 : i64, tpu.core_type = #tpu.core_type<tc>, window_params = [{transform_indices = @transform_0, window_bounds = array<i64: 1, 8, 4, 18>}, {transform_indices = @transform_1, window_bounds = array<i64: 1, 2, 4, 18>}, {pipeline_mode = #tpu.pipeline_mode<synchronous>, transform_indices = @transform_2, window_bounds = array<i64: 8, 36>}, {pipeline_mode = #tpu.pipeline_mode<synchronous>, transform_indices = @transform_3, window_bounds = array<i64: 4, 1>}, {transform_indices = @transform_4, window_bounds = array<i64: 1, 8, 4, 16>}]} {
    %c0 = arith.constant 0 : index
    %c0_0 = arith.constant 0 : index
    %0 = vector.load %arg5[%c0, %c0_0] : memref<4x1xf32, #tpu.memory_space<vmem>>, vector<4x1xf32>
    %c0_1 = arith.constant 0 : index
    %c0_2 = arith.constant 0 : index
    %1 = vector.load %arg4[%c0_1, %c0_2] : memref<8x36xf32, #tpu.memory_space<vmem>>, vector<8x4xf32>
    %c0_3 = arith.constant 0 : index
    %c4 = arith.constant 4 : index
    %2 = vector.load %arg4[%c0_3, %c4] : memref<8x36xf32, #tpu.memory_space<vmem>>, vector<8x4xf32>
    %c0_4 = arith.constant 0 : index
    %c8 = arith.constant 8 : index
    %3 = vector.load %arg4[%c0_4, %c8] : memref<8x36xf32, #tpu.memory_space<vmem>>, vector<8x4xf32>
    %c0_5 = arith.constant 0 : index
    %c12 = arith.constant 12 : index
    %4 = vector.load %arg4[%c0_5, %c12] : memref<8x36xf32, #tpu.memory_space<vmem>>, vector<8x4xf32>
    %c0_6 = arith.constant 0 : index
    %c16 = arith.constant 16 : index
    %5 = vector.load %arg4[%c0_6, %c16] : memref<8x36xf32, #tpu.memory_space<vmem>>, vector<8x4xf32>
    %c0_7 = arith.constant 0 : index
    %c20 = arith.constant 20 : index
    %6 = vector.load %arg4[%c0_7, %c20] : memref<8x36xf32, #tpu.memory_space<vmem>>, vector<8x4xf32>
    %c0_8 = arith.constant 0 : index
    %c24 = arith.constant 24 : index
    %7 = vector.load %arg4[%c0_8, %c24] : memref<8x36xf32, #tpu.memory_space<vmem>>, vector<8x4xf32>
    %c0_9 = arith.constant 0 : index
    %c28 = arith.constant 28 : index
    %8 = vector.load %arg4[%c0_9, %c28] : memref<8x36xf32, #tpu.memory_space<vmem>>, vector<8x4xf32>
    %c0_10 = arith.constant 0 : index
    %c32 = arith.constant 32 : index
    %9 = vector.load %arg4[%c0_10, %c32] : memref<8x36xf32, #tpu.memory_space<vmem>>, vector<8x4xf32>
    %c0_11 = arith.constant 0 : index
    %c0_12 = arith.constant 0 : index
    %c0_13 = arith.constant 0 : index
    %c0_14 = arith.constant 0 : index
    %10 = vector.load %arg2[%c0_11, %c0_12, %c0_13, %c0_14] : memref<1x8x4x18xf32, #tpu.memory_space<vmem>>, vector<1x1x4x18xf32>
    %11 = vector.shape_cast %10 : vector<1x1x4x18xf32> to vector<4x18xf32>
    %c0_15 = arith.constant 0 : index
    %c1 = arith.constant 1 : index
    %c0_16 = arith.constant 0 : index
    %c0_17 = arith.constant 0 : index
    %12 = vector.load %arg2[%c0_15, %c1, %c0_16, %c0_17] : memref<1x8x4x18xf32, #tpu.memory_space<vmem>>, vector<1x1x4x18xf32>
    %13 = vector.shape_cast %12 : vector<1x1x4x18xf32> to vector<4x18xf32>
    %c0_18 = arith.constant 0 : index
    %c2 = arith.constant 2 : index
    %c0_19 = arith.constant 0 : index
    %c0_20 = arith.constant 0 : index
    %14 = vector.load %arg2[%c0_18, %c2, %c0_19, %c0_20] : memref<1x8x4x18xf32, #tpu.memory_space<vmem>>, vector<1x1x4x18xf32>
    %15 = vector.shape_cast %14 : vector<1x1x4x18xf32> to vector<4x18xf32>
    %c0_21 = arith.constant 0 : index
    %c3 = arith.constant 3 : index
    %c0_22 = arith.constant 0 : index
    %c0_23 = arith.constant 0 : index
    %16 = vector.load %arg2[%c0_21, %c3, %c0_22, %c0_23] : memref<1x8x4x18xf32, #tpu.memory_space<vmem>>, vector<1x1x4x18xf32>
    %17 = vector.shape_cast %16 : vector<1x1x4x18xf32> to vector<4x18xf32>
    %c0_24 = arith.constant 0 : index
    %c4_25 = arith.constant 4 : index
    %c0_26 = arith.constant 0 : index
    %c0_27 = arith.constant 0 : index
    %18 = vector.load %arg2[%c0_24, %c4_25, %c0_26, %c0_27] : memref<1x8x4x18xf32, #tpu.memory_space<vmem>>, vector<1x1x4x18xf32>
    %19 = vector.shape_cast %18 : vector<1x1x4x18xf32> to vector<4x18xf32>
    %c0_28 = arith.constant 0 : index
    %c5 = arith.constant 5 : index
    %c0_29 = arith.constant 0 : index
    %c0_30 = arith.constant 0 : index
    %20 = vector.load %arg2[%c0_28, %c5, %c0_29, %c0_30] : memref<1x8x4x18xf32, #tpu.memory_space<vmem>>, vector<1x1x4x18xf32>
    %21 = vector.shape_cast %20 : vector<1x1x4x18xf32> to vector<4x18xf32>
    %c0_31 = arith.constant 0 : index
    %c6 = arith.constant 6 : index
    %c0_32 = arith.constant 0 : index
    %c0_33 = arith.constant 0 : index
    %22 = vector.load %arg2[%c0_31, %c6, %c0_32, %c0_33] : memref<1x8x4x18xf32, #tpu.memory_space<vmem>>, vector<1x1x4x18xf32>
    %23 = vector.shape_cast %22 : vector<1x1x4x18xf32> to vector<4x18xf32>
    %c0_34 = arith.constant 0 : index
    %c7 = arith.constant 7 : index
    %c0_35 = arith.constant 0 : index
    %c0_36 = arith.constant 0 : index
    %24 = vector.load %arg2[%c0_34, %c7, %c0_35, %c0_36] : memref<1x8x4x18xf32, #tpu.memory_space<vmem>>, vector<1x1x4x18xf32>
    %25 = vector.shape_cast %24 : vector<1x1x4x18xf32> to vector<4x18xf32>
    %c0_37 = arith.constant 0 : index
    %c0_38 = arith.constant 0 : index
    %c0_39 = arith.constant 0 : index
    %c0_40 = arith.constant 0 : index
    %26 = vector.load %arg3[%c0_37, %c0_38, %c0_39, %c0_40] : memref<1x2x4x18xf32, #tpu.memory_space<vmem>>, vector<1x1x4x18xf32>
    %27 = vector.shape_cast %26 : vector<1x1x4x18xf32> to vector<4x18xf32>
    %c0_41 = arith.constant 0 : index
    %c1_42 = arith.constant 1 : index
    %c0_43 = arith.constant 0 : index
    %c0_44 = arith.constant 0 : index
    %28 = vector.load %arg3[%c0_41, %c1_42, %c0_43, %c0_44] : memref<1x2x4x18xf32, #tpu.memory_space<vmem>>, vector<1x1x4x18xf32>
    %29 = vector.shape_cast %28 : vector<1x1x4x18xf32> to vector<4x18xf32>
    %30 = vector.extract_strided_slice %11 {offsets = [0, 0], sizes = [4, 16], strides = [1, 1]} : vector<4x18xf32> to vector<4x16xf32>
    %cst = arith.constant dense<0.000000e+00> : vector<8x16xf32>
    %31 = tpu.matmul %1, %30, %cst {dimension_numbers = #tpu.dot_dimension_numbers<[1], [0], [0], [1], [0, 0, 1, 1], [], []>} : vector<8x4xf32>, vector<4x16xf32>, vector<8x16xf32> -> vector<8x16xf32>
    %32 = vector.extract_strided_slice %11 {offsets = [0, 1], sizes = [4, 16], strides = [1, 1]} : vector<4x18xf32> to vector<4x16xf32>
    %cst_45 = arith.constant dense<0.000000e+00> : vector<8x16xf32>
    %33 = tpu.matmul %2, %32, %cst_45 {dimension_numbers = #tpu.dot_dimension_numbers<[1], [0], [0], [1], [0, 0, 1, 1], [], []>} : vector<8x4xf32>, vector<4x16xf32>, vector<8x16xf32> -> vector<8x16xf32>
    %34 = arith.addf %31, %33 : vector<8x16xf32>
    %35 = vector.extract_strided_slice %11 {offsets = [0, 2], sizes = [4, 16], strides = [1, 1]} : vector<4x18xf32> to vector<4x16xf32>
    %cst_46 = arith.constant dense<0.000000e+00> : vector<8x16xf32>
    %36 = tpu.matmul %3, %35, %cst_46 {dimension_numbers = #tpu.dot_dimension_numbers<[1], [0], [0], [1], [0, 0, 1, 1], [], []>} : vector<8x4xf32>, vector<4x16xf32>, vector<8x16xf32> -> vector<8x16xf32>
    %37 = arith.addf %34, %36 : vector<8x16xf32>
    %38 = vector.extract_strided_slice %13 {offsets = [0, 0], sizes = [4, 16], strides = [1, 1]} : vector<4x18xf32> to vector<4x16xf32>
    %cst_47 = arith.constant dense<0.000000e+00> : vector<8x16xf32>
    %39 = tpu.matmul %4, %38, %cst_47 {dimension_numbers = #tpu.dot_dimension_numbers<[1], [0], [0], [1], [0, 0, 1, 1], [], []>} : vector<8x4xf32>, vector<4x16xf32>, vector<8x16xf32> -> vector<8x16xf32>
    %40 = arith.addf %37, %39 : vector<8x16xf32>
    %41 = vector.extract_strided_slice %13 {offsets = [0, 1], sizes = [4, 16], strides = [1, 1]} : vector<4x18xf32> to vector<4x16xf32>
    %cst_48 = arith.constant dense<0.000000e+00> : vector<8x16xf32>
    %42 = tpu.matmul %5, %41, %cst_48 {dimension_numbers = #tpu.dot_dimension_numbers<[1], [0], [0], [1], [0, 0, 1, 1], [], []>} : vector<8x4xf32>, vector<4x16xf32>, vector<8x16xf32> -> vector<8x16xf32>
    %43 = arith.addf %40, %42 : vector<8x16xf32>
    %44 = vector.extract_strided_slice %13 {offsets = [0, 2], sizes = [4, 16], strides = [1, 1]} : vector<4x18xf32> to vector<4x16xf32>
    %cst_49 = arith.constant dense<0.000000e+00> : vector<8x16xf32>
    %45 = tpu.matmul %6, %44, %cst_49 {dimension_numbers = #tpu.dot_dimension_numbers<[1], [0], [0], [1], [0, 0, 1, 1], [], []>} : vector<8x4xf32>, vector<4x16xf32>, vector<8x16xf32> -> vector<8x16xf32>
    %46 = arith.addf %43, %45 : vector<8x16xf32>
    %47 = vector.extract_strided_slice %15 {offsets = [0, 0], sizes = [4, 16], strides = [1, 1]} : vector<4x18xf32> to vector<4x16xf32>
    %cst_50 = arith.constant dense<0.000000e+00> : vector<8x16xf32>
    %48 = tpu.matmul %7, %47, %cst_50 {dimension_numbers = #tpu.dot_dimension_numbers<[1], [0], [0], [1], [0, 0, 1, 1], [], []>} : vector<8x4xf32>, vector<4x16xf32>, vector<8x16xf32> -> vector<8x16xf32>
    %49 = arith.addf %46, %48 : vector<8x16xf32>
    %50 = vector.extract_strided_slice %15 {offsets = [0, 1], sizes = [4, 16], strides = [1, 1]} : vector<4x18xf32> to vector<4x16xf32>
    %cst_51 = arith.constant dense<0.000000e+00> : vector<8x16xf32>
    %51 = tpu.matmul %8, %50, %cst_51 {dimension_numbers = #tpu.dot_dimension_numbers<[1], [0], [0], [1], [0, 0, 1, 1], [], []>} : vector<8x4xf32>, vector<4x16xf32>, vector<8x16xf32> -> vector<8x16xf32>
    %52 = arith.addf %49, %51 : vector<8x16xf32>
    %53 = vector.extract_strided_slice %15 {offsets = [0, 2], sizes = [4, 16], strides = [1, 1]} : vector<4x18xf32> to vector<4x16xf32>
    %cst_52 = arith.constant dense<0.000000e+00> : vector<8x16xf32>
    %54 = tpu.matmul %9, %53, %cst_52 {dimension_numbers = #tpu.dot_dimension_numbers<[1], [0], [0], [1], [0, 0, 1, 1], [], []>} : vector<8x4xf32>, vector<4x16xf32>, vector<8x16xf32> -> vector<8x16xf32>
    %55 = arith.addf %52, %54 : vector<8x16xf32>
    %56 = vector.extract_strided_slice %55 {offsets = [0, 0], sizes = [4, 16], strides = [1, 1]} : vector<8x16xf32> to vector<4x16xf32>
    %57 = vector.broadcast %0 : vector<4x1xf32> to vector<4x16xf32>
    %58 = arith.addf %56, %57 : vector<4x16xf32>
    %59 = vector.extract_strided_slice %55 {offsets = [4, 0], sizes = [4, 16], strides = [1, 1]} : vector<8x16xf32> to vector<4x16xf32>
    %60 = vector.broadcast %0 : vector<4x1xf32> to vector<4x16xf32>
    %61 = arith.addf %59, %60 : vector<4x16xf32>
    %62 = arith.addf %58, %61 : vector<4x16xf32>
    %63 = arith.negf %62 : vector<4x16xf32>
    %64 = math.exp %63 : vector<4x16xf32>
    %cst_53 = arith.constant 1.000000e+00 : f32
    %65 = vector.broadcast %cst_53 : f32 to vector<4x16xf32>
    %66 = arith.addf %65, %64 : vector<4x16xf32>
    %67 = arith.divf %65, %66 : vector<4x16xf32>
    %c0_54 = arith.constant 0 : index
    %c1_55 = arith.constant 1 : index
    %c0_56 = arith.constant 0 : index
    %c1_57 = arith.constant 1 : index
    %68 = vector.load %arg2[%c0_54, %c1_55, %c0_56, %c1_57] : memref<1x8x4x18xf32, #tpu.memory_space<vmem>>, vector<1x1x4x16xf32>
    %69 = vector.shape_cast %68 : vector<1x1x4x16xf32> to vector<4x16xf32>
    %70 = arith.addf %69, %61 : vector<4x16xf32>
    %71 = arith.subf %58, %61 : vector<4x16xf32>
    %72 = arith.mulf %67, %71 : vector<4x16xf32>
    %73 = arith.addf %70, %72 : vector<4x16xf32>
    %c0_58 = arith.constant 0 : index
    %c0_59 = arith.constant 0 : index
    %c0_60 = arith.constant 0 : index
    %c0_61 = arith.constant 0 : index
    %74 = vector.load %arg6[%c0_58, %c0_59, %c0_60, %c0_61] : memref<1x8x4x16xf32, #tpu.memory_space<vmem>>, vector<1x1x4x16xf32>
    %75 = vector.shape_cast %74 : vector<1x1x4x16xf32> to vector<4x16xf32>
    %76 = vector.shape_cast %73 : vector<4x16xf32> to vector<1x1x4x16xf32>
    tpu.vector_store %arg6[%c0_58, %c0_59, %c0_60, %c0_61], %76 {strides = array<i32>} : memref<1x8x4x16xf32, #tpu.memory_space<vmem>>, vector<1x1x4x16xf32>,
    %77 = vector.extract_strided_slice %13 {offsets = [0, 0], sizes = [4, 16], strides = [1, 1]} : vector<4x18xf32> to vector<4x16xf32>
    %cst_62 = arith.constant dense<0.000000e+00> : vector<8x16xf32>
    %78 = tpu.matmul %1, %77, %cst_62 {dimension_numbers = #tpu.dot_dimension_numbers<[1], [0], [0], [1], [0, 0, 1, 1], [], []>} : vector<8x4xf32>, vector<4x16xf32>, vector<8x16xf32> -> vector<8x16xf32>
    %79 = vector.extract_strided_slice %13 {offsets = [0, 1], sizes = [4, 16], strides = [1, 1]} : vector<4x18xf32> to vector<4x16xf32>
    %cst_63 = arith.constant dense<0.000000e+00> : vector<8x16xf32>
    %80 = tpu.matmul %2, %79, %cst_63 {dimension_numbers = #tpu.dot_dimension_numbers<[1], [0], [0], [1], [0, 0, 1, 1], [], []>} : vector<8x4xf32>, vector<4x16xf32>, vector<8x16xf32> -> vector<8x16xf32>
    %81 = arith.addf %78, %80 : vector<8x16xf32>
    %82 = vector.extract_strided_slice %13 {offsets = [0, 2], sizes = [4, 16], strides = [1, 1]} : vector<4x18xf32> to vector<4x16xf32>
    %cst_64 = arith.constant dense<0.000000e+00> : vector<8x16xf32>
    %83 = tpu.matmul %3, %82, %cst_64 {dimension_numbers = #tpu.dot_dimension_numbers<[1], [0], [0], [1], [0, 0, 1, 1], [], []>} : vector<8x4xf32>, vector<4x16xf32>, vector<8x16xf32> -> vector<8x16xf32>
    %84 = arith.addf %81, %83 : vector<8x16xf32>
    %85 = vector.extract_strided_slice %15 {offsets = [0, 0], sizes = [4, 16], strides = [1, 1]} : vector<4x18xf32> to vector<4x16xf32>
    %cst_65 = arith.constant dense<0.000000e+00> : vector<8x16xf32>
    %86 = tpu.matmul %4, %85, %cst_65 {dimension_numbers = #tpu.dot_dimension_numbers<[1], [0], [0], [1], [0, 0, 1, 1], [], []>} : vector<8x4xf32>, vector<4x16xf32>, vector<8x16xf32> -> vector<8x16xf32>
    %87 = arith.addf %84, %86 : vector<8x16xf32>
    %88 = vector.extract_strided_slice %15 {offsets = [0, 1], sizes = [4, 16], strides = [1, 1]} : vector<4x18xf32> to vector<4x16xf32>
    %cst_66 = arith.constant dense<0.000000e+00> : vector<8x16xf32>
    %89 = tpu.matmul %5, %88, %cst_66 {dimension_numbers = #tpu.dot_dimension_numbers<[1], [0], [0], [1], [0, 0, 1, 1], [], []>} : vector<8x4xf32>, vector<4x16xf32>, vector<8x16xf32> -> vector<8x16xf32>
    %90 = arith.addf %87, %89 : vector<8x16xf32>
    %91 = vector.extract_strided_slice %15 {offsets = [0, 2], sizes = [4, 16], strides = [1, 1]} : vector<4x18xf32> to vector<4x16xf32>
    %cst_67 = arith.constant dense<0.000000e+00> : vector<8x16xf32>
    %92 = tpu.matmul %6, %91, %cst_67 {dimension_numbers = #tpu.dot_dimension_numbers<[1], [0], [0], [1], [0, 0, 1, 1], [], []>} : vector<8x4xf32>, vector<4x16xf32>, vector<8x16xf32> -> vector<8x16xf32>
    %93 = arith.addf %90, %92 : vector<8x16xf32>
    %94 = vector.extract_strided_slice %17 {offsets = [0, 0], sizes = [4, 16], strides = [1, 1]} : vector<4x18xf32> to vector<4x16xf32>
    %cst_68 = arith.constant dense<0.000000e+00> : vector<8x16xf32>
    %95 = tpu.matmul %7, %94, %cst_68 {dimension_numbers = #tpu.dot_dimension_numbers<[1], [0], [0], [1], [0, 0, 1, 1], [], []>} : vector<8x4xf32>, vector<4x16xf32>, vector<8x16xf32> -> vector<8x16xf32>
    %96 = arith.addf %93, %95 : vector<8x16xf32>
    %97 = vector.extract_strided_slice %17 {offsets = [0, 1], sizes = [4, 16], strides = [1, 1]} : vector<4x18xf32> to vector<4x16xf32>
    %cst_69 = arith.constant dense<0.000000e+00> : vector<8x16xf32>
    %98 = tpu.matmul %8, %97, %cst_69 {dimension_numbers = #tpu.dot_dimension_numbers<[1], [0], [0], [1], [0, 0, 1, 1], [], []>} : vector<8x4xf32>, vector<4x16xf32>, vector<8x16xf32> -> vector<8x16xf32>
    %99 = arith.addf %96, %98 : vector<8x16xf32>
    %100 = vector.extract_strided_slice %17 {offsets = [0, 2], sizes = [4, 16], strides = [1, 1]} : vector<4x18xf32> to vector<4x16xf32>
    %cst_70 = arith.constant dense<0.000000e+00> : vector<8x16xf32>
    %101 = tpu.matmul %9, %100, %cst_70 {dimension_numbers = #tpu.dot_dimension_numbers<[1], [0], [0], [1], [0, 0, 1, 1], [], []>} : vector<8x4xf32>, vector<4x16xf32>, vector<8x16xf32> -> vector<8x16xf32>
    %102 = arith.addf %99, %101 : vector<8x16xf32>
    %103 = vector.extract_strided_slice %102 {offsets = [0, 0], sizes = [4, 16], strides = [1, 1]} : vector<8x16xf32> to vector<4x16xf32>
    %104 = vector.broadcast %0 : vector<4x1xf32> to vector<4x16xf32>
    %105 = arith.addf %103, %104 : vector<4x16xf32>
    %106 = vector.extract_strided_slice %102 {offsets = [4, 0], sizes = [4, 16], strides = [1, 1]} : vector<8x16xf32> to vector<4x16xf32>
    %107 = vector.broadcast %0 : vector<4x1xf32> to vector<4x16xf32>
    %108 = arith.addf %106, %107 : vector<4x16xf32>
    %109 = arith.addf %105, %108 : vector<4x16xf32>
    %110 = arith.negf %109 : vector<4x16xf32>
    %111 = math.exp %110 : vector<4x16xf32>
    %cst_71 = arith.constant 1.000000e+00 : f32
    %112 = vector.broadcast %cst_71 : f32 to vector<4x16xf32>
    %113 = arith.addf %112, %111 : vector<4x16xf32>
    %114 = arith.divf %112, %113 : vector<4x16xf32>
    %c0_72 = arith.constant 0 : index
    %c2_73 = arith.constant 2 : index
    %c0_74 = arith.constant 0 : index
    %c1_75 = arith.constant 1 : index
    %115 = vector.load %arg2[%c0_72, %c2_73, %c0_74, %c1_75] : memref<1x8x4x18xf32, #tpu.memory_space<vmem>>, vector<1x1x4x16xf32>
    %116 = vector.shape_cast %115 : vector<1x1x4x16xf32> to vector<4x16xf32>
    %117 = arith.addf %116, %108 : vector<4x16xf32>
    %118 = arith.subf %105, %108 : vector<4x16xf32>
    %119 = arith.mulf %114, %118 : vector<4x16xf32>
    %120 = arith.addf %117, %119 : vector<4x16xf32>
    %c0_76 = arith.constant 0 : index
    %c1_77 = arith.constant 1 : index
    %c0_78 = arith.constant 0 : index
    %c0_79 = arith.constant 0 : index
    %121 = vector.load %arg6[%c0_76, %c1_77, %c0_78, %c0_79] : memref<1x8x4x16xf32, #tpu.memory_space<vmem>>, vector<1x1x4x16xf32>
    %122 = vector.shape_cast %121 : vector<1x1x4x16xf32> to vector<4x16xf32>
    %123 = vector.shape_cast %120 : vector<4x16xf32> to vector<1x1x4x16xf32>
    tpu.vector_store %arg6[%c0_76, %c1_77, %c0_78, %c0_79], %123 {strides = array<i32>} : memref<1x8x4x16xf32, #tpu.memory_space<vmem>>, vector<1x1x4x16xf32>,
    %124 = vector.extract_strided_slice %15 {offsets = [0, 0], sizes = [4, 16], strides = [1, 1]} : vector<4x18xf32> to vector<4x16xf32>
    %cst_80 = arith.constant dense<0.000000e+00> : vector<8x16xf32>
    %125 = tpu.matmul %1, %124, %cst_80 {dimension_numbers = #tpu.dot_dimension_numbers<[1], [0], [0], [1], [0, 0, 1, 1], [], []>} : vector<8x4xf32>, vector<4x16xf32>, vector<8x16xf32> -> vector<8x16xf32>
    %126 = vector.extract_strided_slice %15 {offsets = [0, 1], sizes = [4, 16], strides = [1, 1]} : vector<4x18xf32> to vector<4x16xf32>
    %cst_81 = arith.constant dense<0.000000e+00> : vector<8x16xf32>
    %127 = tpu.matmul %2, %126, %cst_81 {dimension_numbers = #tpu.dot_dimension_numbers<[1], [0], [0], [1], [0, 0, 1, 1], [], []>} : vector<8x4xf32>, vector<4x16xf32>, vector<8x16xf32> -> vector<8x16xf32>
    %128 = arith.addf %125, %127 : vector<8x16xf32>
    %129 = vector.extract_strided_slice %15 {offsets = [0, 2], sizes = [4, 16], strides = [1, 1]} : vector<4x18xf32> to vector<4x16xf32>
    %cst_82 = arith.constant dense<0.000000e+00> : vector<8x16xf32>
    %130 = tpu.matmul %3, %129, %cst_82 {dimension_numbers = #tpu.dot_dimension_numbers<[1], [0], [0], [1], [0, 0, 1, 1], [], []>} : vector<8x4xf32>, vector<4x16xf32>, vector<8x16xf32> -> vector<8x16xf32>
    %131 = arith.addf %128, %130 : vector<8x16xf32>
    %132 = vector.extract_strided_slice %17 {offsets = [0, 0], sizes = [4, 16], strides = [1, 1]} : vector<4x18xf32> to vector<4x16xf32>
    %cst_83 = arith.constant dense<0.000000e+00> : vector<8x16xf32>
    %133 = tpu.matmul %4, %132, %cst_83 {dimension_numbers = #tpu.dot_dimension_numbers<[1], [0], [0], [1], [0, 0, 1, 1], [], []>} : vector<8x4xf32>, vector<4x16xf32>, vector<8x16xf32> -> vector<8x16xf32>
    %134 = arith.addf %131, %133 : vector<8x16xf32>
    %135 = vector.extract_strided_slice %17 {offsets = [0, 1], sizes = [4, 16], strides = [1, 1]} : vector<4x18xf32> to vector<4x16xf32>
    %cst_84 = arith.constant dense<0.000000e+00> : vector<8x16xf32>
    %136 = tpu.matmul %5, %135, %cst_84 {dimension_numbers = #tpu.dot_dimension_numbers<[1], [0], [0], [1], [0, 0, 1, 1], [], []>} : vector<8x4xf32>, vector<4x16xf32>, vector<8x16xf32> -> vector<8x16xf32>
    %137 = arith.addf %134, %136 : vector<8x16xf32>
    %138 = vector.extract_strided_slice %17 {offsets = [0, 2], sizes = [4, 16], strides = [1, 1]} : vector<4x18xf32> to vector<4x16xf32>
    %cst_85 = arith.constant dense<0.000000e+00> : vector<8x16xf32>
    %139 = tpu.matmul %6, %138, %cst_85 {dimension_numbers = #tpu.dot_dimension_numbers<[1], [0], [0], [1], [0, 0, 1, 1], [], []>} : vector<8x4xf32>, vector<4x16xf32>, vector<8x16xf32> -> vector<8x16xf32>
    %140 = arith.addf %137, %139 : vector<8x16xf32>
    %141 = vector.extract_strided_slice %19 {offsets = [0, 0], sizes = [4, 16], strides = [1, 1]} : vector<4x18xf32> to vector<4x16xf32>
    %cst_86 = arith.constant dense<0.000000e+00> : vector<8x16xf32>
    %142 = tpu.matmul %7, %141, %cst_86 {dimension_numbers = #tpu.dot_dimension_numbers<[1], [0], [0], [1], [0, 0, 1, 1], [], []>} : vector<8x4xf32>, vector<4x16xf32>, vector<8x16xf32> -> vector<8x16xf32>
    %143 = arith.addf %140, %142 : vector<8x16xf32>
    %144 = vector.extract_strided_slice %19 {offsets = [0, 1], sizes = [4, 16], strides = [1, 1]} : vector<4x18xf32> to vector<4x16xf32>
    %cst_87 = arith.constant dense<0.000000e+00> : vector<8x16xf32>
    %145 = tpu.matmul %8, %144, %cst_87 {dimension_numbers = #tpu.dot_dimension_numbers<[1], [0], [0], [1], [0, 0, 1, 1], [], []>} : vector<8x4xf32>, vector<4x16xf32>, vector<8x16xf32> -> vector<8x16xf32>
    %146 = arith.addf %143, %145 : vector<8x16xf32>
    %147 = vector.extract_strided_slice %19 {offsets = [0, 2], sizes = [4, 16], strides = [1, 1]} : vector<4x18xf32> to vector<4x16xf32>
    %cst_88 = arith.constant dense<0.000000e+00> : vector<8x16xf32>
    %148 = tpu.matmul %9, %147, %cst_88 {dimension_numbers = #tpu.dot_dimension_numbers<[1], [0], [0], [1], [0, 0, 1, 1], [], []>} : vector<8x4xf32>, vector<4x16xf32>, vector<8x16xf32> -> vector<8x16xf32>
    %149 = arith.addf %146, %148 : vector<8x16xf32>
    %150 = vector.extract_strided_slice %149 {offsets = [0, 0], sizes = [4, 16], strides = [1, 1]} : vector<8x16xf32> to vector<4x16xf32>
    %151 = vector.broadcast %0 : vector<4x1xf32> to vector<4x16xf32>
    %152 = arith.addf %150, %151 : vector<4x16xf32>
    %153 = vector.extract_strided_slice %149 {offsets = [4, 0], sizes = [4, 16], strides = [1, 1]} : vector<8x16xf32> to vector<4x16xf32>
    %154 = vector.broadcast %0 : vector<4x1xf32> to vector<4x16xf32>
    %155 = arith.addf %153, %154 : vector<4x16xf32>
    %156 = arith.addf %152, %155 : vector<4x16xf32>
    %157 = arith.negf %156 : vector<4x16xf32>
    %158 = math.exp %157 : vector<4x16xf32>
    %cst_89 = arith.constant 1.000000e+00 : f32
    %159 = vector.broadcast %cst_89 : f32 to vector<4x16xf32>
    %160 = arith.addf %159, %158 : vector<4x16xf32>
    %161 = arith.divf %159, %160 : vector<4x16xf32>
    %c0_90 = arith.constant 0 : index
    %c3_91 = arith.constant 3 : index
    %c0_92 = arith.constant 0 : index
    %c1_93 = arith.constant 1 : index
    %162 = vector.load %arg2[%c0_90, %c3_91, %c0_92, %c1_93] : memref<1x8x4x18xf32, #tpu.memory_space<vmem>>, vector<1x1x4x16xf32>
    %163 = vector.shape_cast %162 : vector<1x1x4x16xf32> to vector<4x16xf32>
    %164 = arith.addf %163, %155 : vector<4x16xf32>
    %165 = arith.subf %152, %155 : vector<4x16xf32>
    %166 = arith.mulf %161, %165 : vector<4x16xf32>
    %167 = arith.addf %164, %166 : vector<4x16xf32>
    %c0_94 = arith.constant 0 : index
    %c2_95 = arith.constant 2 : index
    %c0_96 = arith.constant 0 : index
    %c0_97 = arith.constant 0 : index
    %168 = vector.load %arg6[%c0_94, %c2_95, %c0_96, %c0_97] : memref<1x8x4x16xf32, #tpu.memory_space<vmem>>, vector<1x1x4x16xf32>
    %169 = vector.shape_cast %168 : vector<1x1x4x16xf32> to vector<4x16xf32>
    %170 = vector.shape_cast %167 : vector<4x16xf32> to vector<1x1x4x16xf32>
    tpu.vector_store %arg6[%c0_94, %c2_95, %c0_96, %c0_97], %170 {strides = array<i32>} : memref<1x8x4x16xf32, #tpu.memory_space<vmem>>, vector<1x1x4x16xf32>,
    %171 = vector.extract_strided_slice %17 {offsets = [0, 0], sizes = [4, 16], strides = [1, 1]} : vector<4x18xf32> to vector<4x16xf32>
    %cst_98 = arith.constant dense<0.000000e+00> : vector<8x16xf32>
    %172 = tpu.matmul %1, %171, %cst_98 {dimension_numbers = #tpu.dot_dimension_numbers<[1], [0], [0], [1], [0, 0, 1, 1], [], []>} : vector<8x4xf32>, vector<4x16xf32>, vector<8x16xf32> -> vector<8x16xf32>
    %173 = vector.extract_strided_slice %17 {offsets = [0, 1], sizes = [4, 16], strides = [1, 1]} : vector<4x18xf32> to vector<4x16xf32>
    %cst_99 = arith.constant dense<0.000000e+00> : vector<8x16xf32>
    %174 = tpu.matmul %2, %173, %cst_99 {dimension_numbers = #tpu.dot_dimension_numbers<[1], [0], [0], [1], [0, 0, 1, 1], [], []>} : vector<8x4xf32>, vector<4x16xf32>, vector<8x16xf32> -> vector<8x16xf32>
    %175 = arith.addf %172, %174 : vector<8x16xf32>
    %176 = vector.extract_strided_slice %17 {offsets = [0, 2], sizes = [4, 16], strides = [1, 1]} : vector<4x18xf32> to vector<4x16xf32>
    %cst_100 = arith.constant dense<0.000000e+00> : vector<8x16xf32>
    %177 = tpu.matmul %3, %176, %cst_100 {dimension_numbers = #tpu.dot_dimension_numbers<[1], [0], [0], [1], [0, 0, 1, 1], [], []>} : vector<8x4xf32>, vector<4x16xf32>, vector<8x16xf32> -> vector<8x16xf32>
    %178 = arith.addf %175, %177 : vector<8x16xf32>
    %179 = vector.extract_strided_slice %19 {offsets = [0, 0], sizes = [4, 16], strides = [1, 1]} : vector<4x18xf32> to vector<4x16xf32>
    %cst_101 = arith.constant dense<0.000000e+00> : vector<8x16xf32>
    %180 = tpu.matmul %4, %179, %cst_101 {dimension_numbers = #tpu.dot_dimension_numbers<[1], [0], [0], [1], [0, 0, 1, 1], [], []>} : vector<8x4xf32>, vector<4x16xf32>, vector<8x16xf32> -> vector<8x16xf32>
    %181 = arith.addf %178, %180 : vector<8x16xf32>
    %182 = vector.extract_strided_slice %19 {offsets = [0, 1], sizes = [4, 16], strides = [1, 1]} : vector<4x18xf32> to vector<4x16xf32>
    %cst_102 = arith.constant dense<0.000000e+00> : vector<8x16xf32>
    %183 = tpu.matmul %5, %182, %cst_102 {dimension_numbers = #tpu.dot_dimension_numbers<[1], [0], [0], [1], [0, 0, 1, 1], [], []>} : vector<8x4xf32>, vector<4x16xf32>, vector<8x16xf32> -> vector<8x16xf32>
    %184 = arith.addf %181, %183 : vector<8x16xf32>
    %185 = vector.extract_strided_slice %19 {offsets = [0, 2], sizes = [4, 16], strides = [1, 1]} : vector<4x18xf32> to vector<4x16xf32>
    %cst_103 = arith.constant dense<0.000000e+00> : vector<8x16xf32>
    %186 = tpu.matmul %6, %185, %cst_103 {dimension_numbers = #tpu.dot_dimension_numbers<[1], [0], [0], [1], [0, 0, 1, 1], [], []>} : vector<8x4xf32>, vector<4x16xf32>, vector<8x16xf32> -> vector<8x16xf32>
    %187 = arith.addf %184, %186 : vector<8x16xf32>
    %188 = vector.extract_strided_slice %21 {offsets = [0, 0], sizes = [4, 16], strides = [1, 1]} : vector<4x18xf32> to vector<4x16xf32>
    %cst_104 = arith.constant dense<0.000000e+00> : vector<8x16xf32>
    %189 = tpu.matmul %7, %188, %cst_104 {dimension_numbers = #tpu.dot_dimension_numbers<[1], [0], [0], [1], [0, 0, 1, 1], [], []>} : vector<8x4xf32>, vector<4x16xf32>, vector<8x16xf32> -> vector<8x16xf32>
    %190 = arith.addf %187, %189 : vector<8x16xf32>
    %191 = vector.extract_strided_slice %21 {offsets = [0, 1], sizes = [4, 16], strides = [1, 1]} : vector<4x18xf32> to vector<4x16xf32>
    %cst_105 = arith.constant dense<0.000000e+00> : vector<8x16xf32>
    %192 = tpu.matmul %8, %191, %cst_105 {dimension_numbers = #tpu.dot_dimension_numbers<[1], [0], [0], [1], [0, 0, 1, 1], [], []>} : vector<8x4xf32>, vector<4x16xf32>, vector<8x16xf32> -> vector<8x16xf32>
    %193 = arith.addf %190, %192 : vector<8x16xf32>
    %194 = vector.extract_strided_slice %21 {offsets = [0, 2], sizes = [4, 16], strides = [1, 1]} : vector<4x18xf32> to vector<4x16xf32>
    %cst_106 = arith.constant dense<0.000000e+00> : vector<8x16xf32>
    %195 = tpu.matmul %9, %194, %cst_106 {dimension_numbers = #tpu.dot_dimension_numbers<[1], [0], [0], [1], [0, 0, 1, 1], [], []>} : vector<8x4xf32>, vector<4x16xf32>, vector<8x16xf32> -> vector<8x16xf32>
    %196 = arith.addf %193, %195 : vector<8x16xf32>
    %197 = vector.extract_strided_slice %196 {offsets = [0, 0], sizes = [4, 16], strides = [1, 1]} : vector<8x16xf32> to vector<4x16xf32>
    %198 = vector.broadcast %0 : vector<4x1xf32> to vector<4x16xf32>
    %199 = arith.addf %197, %198 : vector<4x16xf32>
    %200 = vector.extract_strided_slice %196 {offsets = [4, 0], sizes = [4, 16], strides = [1, 1]} : vector<8x16xf32> to vector<4x16xf32>
    %201 = vector.broadcast %0 : vector<4x1xf32> to vector<4x16xf32>
    %202 = arith.addf %200, %201 : vector<4x16xf32>
    %203 = arith.addf %199, %202 : vector<4x16xf32>
    %204 = arith.negf %203 : vector<4x16xf32>
    %205 = math.exp %204 : vector<4x16xf32>
    %cst_107 = arith.constant 1.000000e+00 : f32
    %206 = vector.broadcast %cst_107 : f32 to vector<4x16xf32>
    %207 = arith.addf %206, %205 : vector<4x16xf32>
    %208 = arith.divf %206, %207 : vector<4x16xf32>
    %c0_108 = arith.constant 0 : index
    %c4_109 = arith.constant 4 : index
    %c0_110 = arith.constant 0 : index
    %c1_111 = arith.constant 1 : index
    %209 = vector.load %arg2[%c0_108, %c4_109, %c0_110, %c1_111] : memref<1x8x4x18xf32, #tpu.memory_space<vmem>>, vector<1x1x4x16xf32>
    %210 = vector.shape_cast %209 : vector<1x1x4x16xf32> to vector<4x16xf32>
    %211 = arith.addf %210, %202 : vector<4x16xf32>
    %212 = arith.subf %199, %202 : vector<4x16xf32>
    %213 = arith.mulf %208, %212 : vector<4x16xf32>
    %214 = arith.addf %211, %213 : vector<4x16xf32>
    %c0_112 = arith.constant 0 : index
    %c3_113 = arith.constant 3 : index
    %c0_114 = arith.constant 0 : index
    %c0_115 = arith.constant 0 : index
    %215 = vector.load %arg6[%c0_112, %c3_113, %c0_114, %c0_115] : memref<1x8x4x16xf32, #tpu.memory_space<vmem>>, vector<1x1x4x16xf32>
    %216 = vector.shape_cast %215 : vector<1x1x4x16xf32> to vector<4x16xf32>
    %217 = vector.shape_cast %214 : vector<4x16xf32> to vector<1x1x4x16xf32>
    tpu.vector_store %arg6[%c0_112, %c3_113, %c0_114, %c0_115], %217 {strides = array<i32>} : memref<1x8x4x16xf32, #tpu.memory_space<vmem>>, vector<1x1x4x16xf32>,
    %218 = vector.extract_strided_slice %19 {offsets = [0, 0], sizes = [4, 16], strides = [1, 1]} : vector<4x18xf32> to vector<4x16xf32>
    %cst_116 = arith.constant dense<0.000000e+00> : vector<8x16xf32>
    %219 = tpu.matmul %1, %218, %cst_116 {dimension_numbers = #tpu.dot_dimension_numbers<[1], [0], [0], [1], [0, 0, 1, 1], [], []>} : vector<8x4xf32>, vector<4x16xf32>, vector<8x16xf32> -> vector<8x16xf32>
    %220 = vector.extract_strided_slice %19 {offsets = [0, 1], sizes = [4, 16], strides = [1, 1]} : vector<4x18xf32> to vector<4x16xf32>
    %cst_117 = arith.constant dense<0.000000e+00> : vector<8x16xf32>
    %221 = tpu.matmul %2, %220, %cst_117 {dimension_numbers = #tpu.dot_dimension_numbers<[1], [0], [0], [1], [0, 0, 1, 1], [], []>} : vector<8x4xf32>, vector<4x16xf32>, vector<8x16xf32> -> vector<8x16xf32>
    %222 = arith.addf %219, %221 : vector<8x16xf32>
    %223 = vector.extract_strided_slice %19 {offsets = [0, 2], sizes = [4, 16], strides = [1, 1]} : vector<4x18xf32> to vector<4x16xf32>
    %cst_118 = arith.constant dense<0.000000e+00> : vector<8x16xf32>
    %224 = tpu.matmul %3, %223, %cst_118 {dimension_numbers = #tpu.dot_dimension_numbers<[1], [0], [0], [1], [0, 0, 1, 1], [], []>} : vector<8x4xf32>, vector<4x16xf32>, vector<8x16xf32> -> vector<8x16xf32>
    %225 = arith.addf %222, %224 : vector<8x16xf32>
    %226 = vector.extract_strided_slice %21 {offsets = [0, 0], sizes = [4, 16], strides = [1, 1]} : vector<4x18xf32> to vector<4x16xf32>
    %cst_119 = arith.constant dense<0.000000e+00> : vector<8x16xf32>
    %227 = tpu.matmul %4, %226, %cst_119 {dimension_numbers = #tpu.dot_dimension_numbers<[1], [0], [0], [1], [0, 0, 1, 1], [], []>} : vector<8x4xf32>, vector<4x16xf32>, vector<8x16xf32> -> vector<8x16xf32>
    %228 = arith.addf %225, %227 : vector<8x16xf32>
    %229 = vector.extract_strided_slice %21 {offsets = [0, 1], sizes = [4, 16], strides = [1, 1]} : vector<4x18xf32> to vector<4x16xf32>
    %cst_120 = arith.constant dense<0.000000e+00> : vector<8x16xf32>
    %230 = tpu.matmul %5, %229, %cst_120 {dimension_numbers = #tpu.dot_dimension_numbers<[1], [0], [0], [1], [0, 0, 1, 1], [], []>} : vector<8x4xf32>, vector<4x16xf32>, vector<8x16xf32> -> vector<8x16xf32>
    %231 = arith.addf %228, %230 : vector<8x16xf32>
    %232 = vector.extract_strided_slice %21 {offsets = [0, 2], sizes = [4, 16], strides = [1, 1]} : vector<4x18xf32> to vector<4x16xf32>
    %cst_121 = arith.constant dense<0.000000e+00> : vector<8x16xf32>
    %233 = tpu.matmul %6, %232, %cst_121 {dimension_numbers = #tpu.dot_dimension_numbers<[1], [0], [0], [1], [0, 0, 1, 1], [], []>} : vector<8x4xf32>, vector<4x16xf32>, vector<8x16xf32> -> vector<8x16xf32>
    %234 = arith.addf %231, %233 : vector<8x16xf32>
    %235 = vector.extract_strided_slice %23 {offsets = [0, 0], sizes = [4, 16], strides = [1, 1]} : vector<4x18xf32> to vector<4x16xf32>
    %cst_122 = arith.constant dense<0.000000e+00> : vector<8x16xf32>
    %236 = tpu.matmul %7, %235, %cst_122 {dimension_numbers = #tpu.dot_dimension_numbers<[1], [0], [0], [1], [0, 0, 1, 1], [], []>} : vector<8x4xf32>, vector<4x16xf32>, vector<8x16xf32> -> vector<8x16xf32>
    %237 = arith.addf %234, %236 : vector<8x16xf32>
    %238 = vector.extract_strided_slice %23 {offsets = [0, 1], sizes = [4, 16], strides = [1, 1]} : vector<4x18xf32> to vector<4x16xf32>
    %cst_123 = arith.constant dense<0.000000e+00> : vector<8x16xf32>
    %239 = tpu.matmul %8, %238, %cst_123 {dimension_numbers = #tpu.dot_dimension_numbers<[1], [0], [0], [1], [0, 0, 1, 1], [], []>} : vector<8x4xf32>, vector<4x16xf32>, vector<8x16xf32> -> vector<8x16xf32>
    %240 = arith.addf %237, %239 : vector<8x16xf32>
    %241 = vector.extract_strided_slice %23 {offsets = [0, 2], sizes = [4, 16], strides = [1, 1]} : vector<4x18xf32> to vector<4x16xf32>
    %cst_124 = arith.constant dense<0.000000e+00> : vector<8x16xf32>
    %242 = tpu.matmul %9, %241, %cst_124 {dimension_numbers = #tpu.dot_dimension_numbers<[1], [0], [0], [1], [0, 0, 1, 1], [], []>} : vector<8x4xf32>, vector<4x16xf32>, vector<8x16xf32> -> vector<8x16xf32>
    %243 = arith.addf %240, %242 : vector<8x16xf32>
    %244 = vector.extract_strided_slice %243 {offsets = [0, 0], sizes = [4, 16], strides = [1, 1]} : vector<8x16xf32> to vector<4x16xf32>
    %245 = vector.broadcast %0 : vector<4x1xf32> to vector<4x16xf32>
    %246 = arith.addf %244, %245 : vector<4x16xf32>
    %247 = vector.extract_strided_slice %243 {offsets = [4, 0], sizes = [4, 16], strides = [1, 1]} : vector<8x16xf32> to vector<4x16xf32>
    %248 = vector.broadcast %0 : vector<4x1xf32> to vector<4x16xf32>
    %249 = arith.addf %247, %248 : vector<4x16xf32>
    %250 = arith.addf %246, %249 : vector<4x16xf32>
    %251 = arith.negf %250 : vector<4x16xf32>
    %252 = math.exp %251 : vector<4x16xf32>
    %cst_125 = arith.constant 1.000000e+00 : f32
    %253 = vector.broadcast %cst_125 : f32 to vector<4x16xf32>
    %254 = arith.addf %253, %252 : vector<4x16xf32>
    %255 = arith.divf %253, %254 : vector<4x16xf32>
    %c0_126 = arith.constant 0 : index
    %c5_127 = arith.constant 5 : index
    %c0_128 = arith.constant 0 : index
    %c1_129 = arith.constant 1 : index
    %256 = vector.load %arg2[%c0_126, %c5_127, %c0_128, %c1_129] : memref<1x8x4x18xf32, #tpu.memory_space<vmem>>, vector<1x1x4x16xf32>
    %257 = vector.shape_cast %256 : vector<1x1x4x16xf32> to vector<4x16xf32>
    %258 = arith.addf %257, %249 : vector<4x16xf32>
    %259 = arith.subf %246, %249 : vector<4x16xf32>
    %260 = arith.mulf %255, %259 : vector<4x16xf32>
    %261 = arith.addf %258, %260 : vector<4x16xf32>
    %c0_130 = arith.constant 0 : index
    %c4_131 = arith.constant 4 : index
    %c0_132 = arith.constant 0 : index
    %c0_133 = arith.constant 0 : index
    %262 = vector.load %arg6[%c0_130, %c4_131, %c0_132, %c0_133] : memref<1x8x4x16xf32, #tpu.memory_space<vmem>>, vector<1x1x4x16xf32>
    %263 = vector.shape_cast %262 : vector<1x1x4x16xf32> to vector<4x16xf32>
    %264 = vector.shape_cast %261 : vector<4x16xf32> to vector<1x1x4x16xf32>
    tpu.vector_store %arg6[%c0_130, %c4_131, %c0_132, %c0_133], %264 {strides = array<i32>} : memref<1x8x4x16xf32, #tpu.memory_space<vmem>>, vector<1x1x4x16xf32>,
    %265 = vector.extract_strided_slice %21 {offsets = [0, 0], sizes = [4, 16], strides = [1, 1]} : vector<4x18xf32> to vector<4x16xf32>
    %cst_134 = arith.constant dense<0.000000e+00> : vector<8x16xf32>
    %266 = tpu.matmul %1, %265, %cst_134 {dimension_numbers = #tpu.dot_dimension_numbers<[1], [0], [0], [1], [0, 0, 1, 1], [], []>} : vector<8x4xf32>, vector<4x16xf32>, vector<8x16xf32> -> vector<8x16xf32>
    %267 = vector.extract_strided_slice %21 {offsets = [0, 1], sizes = [4, 16], strides = [1, 1]} : vector<4x18xf32> to vector<4x16xf32>
    %cst_135 = arith.constant dense<0.000000e+00> : vector<8x16xf32>
    %268 = tpu.matmul %2, %267, %cst_135 {dimension_numbers = #tpu.dot_dimension_numbers<[1], [0], [0], [1], [0, 0, 1, 1], [], []>} : vector<8x4xf32>, vector<4x16xf32>, vector<8x16xf32> -> vector<8x16xf32>
    %269 = arith.addf %266, %268 : vector<8x16xf32>
    %270 = vector.extract_strided_slice %21 {offsets = [0, 2], sizes = [4, 16], strides = [1, 1]} : vector<4x18xf32> to vector<4x16xf32>
    %cst_136 = arith.constant dense<0.000000e+00> : vector<8x16xf32>
    %271 = tpu.matmul %3, %270, %cst_136 {dimension_numbers = #tpu.dot_dimension_numbers<[1], [0], [0], [1], [0, 0, 1, 1], [], []>} : vector<8x4xf32>, vector<4x16xf32>, vector<8x16xf32> -> vector<8x16xf32>
    %272 = arith.addf %269, %271 : vector<8x16xf32>
    %273 = vector.extract_strided_slice %23 {offsets = [0, 0], sizes = [4, 16], strides = [1, 1]} : vector<4x18xf32> to vector<4x16xf32>
    %cst_137 = arith.constant dense<0.000000e+00> : vector<8x16xf32>
    %274 = tpu.matmul %4, %273, %cst_137 {dimension_numbers = #tpu.dot_dimension_numbers<[1], [0], [0], [1], [0, 0, 1, 1], [], []>} : vector<8x4xf32>, vector<4x16xf32>, vector<8x16xf32> -> vector<8x16xf32>
    %275 = arith.addf %272, %274 : vector<8x16xf32>
    %276 = vector.extract_strided_slice %23 {offsets = [0, 1], sizes = [4, 16], strides = [1, 1]} : vector<4x18xf32> to vector<4x16xf32>
    %cst_138 = arith.constant dense<0.000000e+00> : vector<8x16xf32>
    %277 = tpu.matmul %5, %276, %cst_138 {dimension_numbers = #tpu.dot_dimension_numbers<[1], [0], [0], [1], [0, 0, 1, 1], [], []>} : vector<8x4xf32>, vector<4x16xf32>, vector<8x16xf32> -> vector<8x16xf32>
    %278 = arith.addf %275, %277 : vector<8x16xf32>
    %279 = vector.extract_strided_slice %23 {offsets = [0, 2], sizes = [4, 16], strides = [1, 1]} : vector<4x18xf32> to vector<4x16xf32>
    %cst_139 = arith.constant dense<0.000000e+00> : vector<8x16xf32>
    %280 = tpu.matmul %6, %279, %cst_139 {dimension_numbers = #tpu.dot_dimension_numbers<[1], [0], [0], [1], [0, 0, 1, 1], [], []>} : vector<8x4xf32>, vector<4x16xf32>, vector<8x16xf32> -> vector<8x16xf32>
    %281 = arith.addf %278, %280 : vector<8x16xf32>
    %282 = vector.extract_strided_slice %25 {offsets = [0, 0], sizes = [4, 16], strides = [1, 1]} : vector<4x18xf32> to vector<4x16xf32>
    %cst_140 = arith.constant dense<0.000000e+00> : vector<8x16xf32>
    %283 = tpu.matmul %7, %282, %cst_140 {dimension_numbers = #tpu.dot_dimension_numbers<[1], [0], [0], [1], [0, 0, 1, 1], [], []>} : vector<8x4xf32>, vector<4x16xf32>, vector<8x16xf32> -> vector<8x16xf32>
    %284 = arith.addf %281, %283 : vector<8x16xf32>
    %285 = vector.extract_strided_slice %25 {offsets = [0, 1], sizes = [4, 16], strides = [1, 1]} : vector<4x18xf32> to vector<4x16xf32>
    %cst_141 = arith.constant dense<0.000000e+00> : vector<8x16xf32>
    %286 = tpu.matmul %8, %285, %cst_141 {dimension_numbers = #tpu.dot_dimension_numbers<[1], [0], [0], [1], [0, 0, 1, 1], [], []>} : vector<8x4xf32>, vector<4x16xf32>, vector<8x16xf32> -> vector<8x16xf32>
    %287 = arith.addf %284, %286 : vector<8x16xf32>
    %288 = vector.extract_strided_slice %25 {offsets = [0, 2], sizes = [4, 16], strides = [1, 1]} : vector<4x18xf32> to vector<4x16xf32>
    %cst_142 = arith.constant dense<0.000000e+00> : vector<8x16xf32>
    %289 = tpu.matmul %9, %288, %cst_142 {dimension_numbers = #tpu.dot_dimension_numbers<[1], [0], [0], [1], [0, 0, 1, 1], [], []>} : vector<8x4xf32>, vector<4x16xf32>, vector<8x16xf32> -> vector<8x16xf32>
    %290 = arith.addf %287, %289 : vector<8x16xf32>
    %291 = vector.extract_strided_slice %290 {offsets = [0, 0], sizes = [4, 16], strides = [1, 1]} : vector<8x16xf32> to vector<4x16xf32>
    %292 = vector.broadcast %0 : vector<4x1xf32> to vector<4x16xf32>
    %293 = arith.addf %291, %292 : vector<4x16xf32>
    %294 = vector.extract_strided_slice %290 {offsets = [4, 0], sizes = [4, 16], strides = [1, 1]} : vector<8x16xf32> to vector<4x16xf32>
    %295 = vector.broadcast %0 : vector<4x1xf32> to vector<4x16xf32>
    %296 = arith.addf %294, %295 : vector<4x16xf32>
    %297 = arith.addf %293, %296 : vector<4x16xf32>
    %298 = arith.negf %297 : vector<4x16xf32>
    %299 = math.exp %298 : vector<4x16xf32>
    %cst_143 = arith.constant 1.000000e+00 : f32
    %300 = vector.broadcast %cst_143 : f32 to vector<4x16xf32>
    %301 = arith.addf %300, %299 : vector<4x16xf32>
    %302 = arith.divf %300, %301 : vector<4x16xf32>
    %c0_144 = arith.constant 0 : index
    %c6_145 = arith.constant 6 : index
    %c0_146 = arith.constant 0 : index
    %c1_147 = arith.constant 1 : index
    %303 = vector.load %arg2[%c0_144, %c6_145, %c0_146, %c1_147] : memref<1x8x4x18xf32, #tpu.memory_space<vmem>>, vector<1x1x4x16xf32>
    %304 = vector.shape_cast %303 : vector<1x1x4x16xf32> to vector<4x16xf32>
    %305 = arith.addf %304, %296 : vector<4x16xf32>
    %306 = arith.subf %293, %296 : vector<4x16xf32>
    %307 = arith.mulf %302, %306 : vector<4x16xf32>
    %308 = arith.addf %305, %307 : vector<4x16xf32>
    %c0_148 = arith.constant 0 : index
    %c5_149 = arith.constant 5 : index
    %c0_150 = arith.constant 0 : index
    %c0_151 = arith.constant 0 : index
    %309 = vector.load %arg6[%c0_148, %c5_149, %c0_150, %c0_151] : memref<1x8x4x16xf32, #tpu.memory_space<vmem>>, vector<1x1x4x16xf32>
    %310 = vector.shape_cast %309 : vector<1x1x4x16xf32> to vector<4x16xf32>
    %311 = vector.shape_cast %308 : vector<4x16xf32> to vector<1x1x4x16xf32>
    tpu.vector_store %arg6[%c0_148, %c5_149, %c0_150, %c0_151], %311 {strides = array<i32>} : memref<1x8x4x16xf32, #tpu.memory_space<vmem>>, vector<1x1x4x16xf32>,
    %312 = vector.extract_strided_slice %23 {offsets = [0, 0], sizes = [4, 16], strides = [1, 1]} : vector<4x18xf32> to vector<4x16xf32>
    %cst_152 = arith.constant dense<0.000000e+00> : vector<8x16xf32>
    %313 = tpu.matmul %1, %312, %cst_152 {dimension_numbers = #tpu.dot_dimension_numbers<[1], [0], [0], [1], [0, 0, 1, 1], [], []>} : vector<8x4xf32>, vector<4x16xf32>, vector<8x16xf32> -> vector<8x16xf32>
    %314 = vector.extract_strided_slice %23 {offsets = [0, 1], sizes = [4, 16], strides = [1, 1]} : vector<4x18xf32> to vector<4x16xf32>
    %cst_153 = arith.constant dense<0.000000e+00> : vector<8x16xf32>
    %315 = tpu.matmul %2, %314, %cst_153 {dimension_numbers = #tpu.dot_dimension_numbers<[1], [0], [0], [1], [0, 0, 1, 1], [], []>} : vector<8x4xf32>, vector<4x16xf32>, vector<8x16xf32> -> vector<8x16xf32>
    %316 = arith.addf %313, %315 : vector<8x16xf32>
    %317 = vector.extract_strided_slice %23 {offsets = [0, 2], sizes = [4, 16], strides = [1, 1]} : vector<4x18xf32> to vector<4x16xf32>
    %cst_154 = arith.constant dense<0.000000e+00> : vector<8x16xf32>
    %318 = tpu.matmul %3, %317, %cst_154 {dimension_numbers = #tpu.dot_dimension_numbers<[1], [0], [0], [1], [0, 0, 1, 1], [], []>} : vector<8x4xf32>, vector<4x16xf32>, vector<8x16xf32> -> vector<8x16xf32>
    %319 = arith.addf %316, %318 : vector<8x16xf32>
    %320 = vector.extract_strided_slice %25 {offsets = [0, 0], sizes = [4, 16], strides = [1, 1]} : vector<4x18xf32> to vector<4x16xf32>
    %cst_155 = arith.constant dense<0.000000e+00> : vector<8x16xf32>
    %321 = tpu.matmul %4, %320, %cst_155 {dimension_numbers = #tpu.dot_dimension_numbers<[1], [0], [0], [1], [0, 0, 1, 1], [], []>} : vector<8x4xf32>, vector<4x16xf32>, vector<8x16xf32> -> vector<8x16xf32>
    %322 = arith.addf %319, %321 : vector<8x16xf32>
    %323 = vector.extract_strided_slice %25 {offsets = [0, 1], sizes = [4, 16], strides = [1, 1]} : vector<4x18xf32> to vector<4x16xf32>
    %cst_156 = arith.constant dense<0.000000e+00> : vector<8x16xf32>
    %324 = tpu.matmul %5, %323, %cst_156 {dimension_numbers = #tpu.dot_dimension_numbers<[1], [0], [0], [1], [0, 0, 1, 1], [], []>} : vector<8x4xf32>, vector<4x16xf32>, vector<8x16xf32> -> vector<8x16xf32>
    %325 = arith.addf %322, %324 : vector<8x16xf32>
    %326 = vector.extract_strided_slice %25 {offsets = [0, 2], sizes = [4, 16], strides = [1, 1]} : vector<4x18xf32> to vector<4x16xf32>
    %cst_157 = arith.constant dense<0.000000e+00> : vector<8x16xf32>
    %327 = tpu.matmul %6, %326, %cst_157 {dimension_numbers = #tpu.dot_dimension_numbers<[1], [0], [0], [1], [0, 0, 1, 1], [], []>} : vector<8x4xf32>, vector<4x16xf32>, vector<8x16xf32> -> vector<8x16xf32>
    %328 = arith.addf %325, %327 : vector<8x16xf32>
    %329 = vector.extract_strided_slice %27 {offsets = [0, 0], sizes = [4, 16], strides = [1, 1]} : vector<4x18xf32> to vector<4x16xf32>
    %cst_158 = arith.constant dense<0.000000e+00> : vector<8x16xf32>
    %330 = tpu.matmul %7, %329, %cst_158 {dimension_numbers = #tpu.dot_dimension_numbers<[1], [0], [0], [1], [0, 0, 1, 1], [], []>} : vector<8x4xf32>, vector<4x16xf32>, vector<8x16xf32> -> vector<8x16xf32>
    %331 = arith.addf %328, %330 : vector<8x16xf32>
    %332 = vector.extract_strided_slice %27 {offsets = [0, 1], sizes = [4, 16], strides = [1, 1]} : vector<4x18xf32> to vector<4x16xf32>
    %cst_159 = arith.constant dense<0.000000e+00> : vector<8x16xf32>
    %333 = tpu.matmul %8, %332, %cst_159 {dimension_numbers = #tpu.dot_dimension_numbers<[1], [0], [0], [1], [0, 0, 1, 1], [], []>} : vector<8x4xf32>, vector<4x16xf32>, vector<8x16xf32> -> vector<8x16xf32>
    %334 = arith.addf %331, %333 : vector<8x16xf32>
    %335 = vector.extract_strided_slice %27 {offsets = [0, 2], sizes = [4, 16], strides = [1, 1]} : vector<4x18xf32> to vector<4x16xf32>
    %cst_160 = arith.constant dense<0.000000e+00> : vector<8x16xf32>
    %336 = tpu.matmul %9, %335, %cst_160 {dimension_numbers = #tpu.dot_dimension_numbers<[1], [0], [0], [1], [0, 0, 1, 1], [], []>} : vector<8x4xf32>, vector<4x16xf32>, vector<8x16xf32> -> vector<8x16xf32>
    %337 = arith.addf %334, %336 : vector<8x16xf32>
    %338 = vector.extract_strided_slice %337 {offsets = [0, 0], sizes = [4, 16], strides = [1, 1]} : vector<8x16xf32> to vector<4x16xf32>
    %339 = vector.broadcast %0 : vector<4x1xf32> to vector<4x16xf32>
    %340 = arith.addf %338, %339 : vector<4x16xf32>
    %341 = vector.extract_strided_slice %337 {offsets = [4, 0], sizes = [4, 16], strides = [1, 1]} : vector<8x16xf32> to vector<4x16xf32>
    %342 = vector.broadcast %0 : vector<4x1xf32> to vector<4x16xf32>
    %343 = arith.addf %341, %342 : vector<4x16xf32>
    %344 = arith.addf %340, %343 : vector<4x16xf32>
    %345 = arith.negf %344 : vector<4x16xf32>
    %346 = math.exp %345 : vector<4x16xf32>
    %cst_161 = arith.constant 1.000000e+00 : f32
    %347 = vector.broadcast %cst_161 : f32 to vector<4x16xf32>
    %348 = arith.addf %347, %346 : vector<4x16xf32>
    %349 = arith.divf %347, %348 : vector<4x16xf32>
    %c0_162 = arith.constant 0 : index
    %c7_163 = arith.constant 7 : index
    %c0_164 = arith.constant 0 : index
    %c1_165 = arith.constant 1 : index
    %350 = vector.load %arg2[%c0_162, %c7_163, %c0_164, %c1_165] : memref<1x8x4x18xf32, #tpu.memory_space<vmem>>, vector<1x1x4x16xf32>
    %351 = vector.shape_cast %350 : vector<1x1x4x16xf32> to vector<4x16xf32>
    %352 = arith.addf %351, %343 : vector<4x16xf32>
    %353 = arith.subf %340, %343 : vector<4x16xf32>
    %354 = arith.mulf %349, %353 : vector<4x16xf32>
    %355 = arith.addf %352, %354 : vector<4x16xf32>
    %c0_166 = arith.constant 0 : index
    %c6_167 = arith.constant 6 : index
    %c0_168 = arith.constant 0 : index
    %c0_169 = arith.constant 0 : index
    %356 = vector.load %arg6[%c0_166, %c6_167, %c0_168, %c0_169] : memref<1x8x4x16xf32, #tpu.memory_space<vmem>>, vector<1x1x4x16xf32>
    %357 = vector.shape_cast %356 : vector<1x1x4x16xf32> to vector<4x16xf32>
    %358 = vector.shape_cast %355 : vector<4x16xf32> to vector<1x1x4x16xf32>
    tpu.vector_store %arg6[%c0_166, %c6_167, %c0_168, %c0_169], %358 {strides = array<i32>} : memref<1x8x4x16xf32, #tpu.memory_space<vmem>>, vector<1x1x4x16xf32>,
    %359 = vector.extract_strided_slice %25 {offsets = [0, 0], sizes = [4, 16], strides = [1, 1]} : vector<4x18xf32> to vector<4x16xf32>
    %cst_170 = arith.constant dense<0.000000e+00> : vector<8x16xf32>
    %360 = tpu.matmul %1, %359, %cst_170 {dimension_numbers = #tpu.dot_dimension_numbers<[1], [0], [0], [1], [0, 0, 1, 1], [], []>} : vector<8x4xf32>, vector<4x16xf32>, vector<8x16xf32> -> vector<8x16xf32>
    %361 = vector.extract_strided_slice %25 {offsets = [0, 1], sizes = [4, 16], strides = [1, 1]} : vector<4x18xf32> to vector<4x16xf32>
    %cst_171 = arith.constant dense<0.000000e+00> : vector<8x16xf32>
    %362 = tpu.matmul %2, %361, %cst_171 {dimension_numbers = #tpu.dot_dimension_numbers<[1], [0], [0], [1], [0, 0, 1, 1], [], []>} : vector<8x4xf32>, vector<4x16xf32>, vector<8x16xf32> -> vector<8x16xf32>
    %363 = arith.addf %360, %362 : vector<8x16xf32>
    %364 = vector.extract_strided_slice %25 {offsets = [0, 2], sizes = [4, 16], strides = [1, 1]} : vector<4x18xf32> to vector<4x16xf32>
    %cst_172 = arith.constant dense<0.000000e+00> : vector<8x16xf32>
    %365 = tpu.matmul %3, %364, %cst_172 {dimension_numbers = #tpu.dot_dimension_numbers<[1], [0], [0], [1], [0, 0, 1, 1], [], []>} : vector<8x4xf32>, vector<4x16xf32>, vector<8x16xf32> -> vector<8x16xf32>
    %366 = arith.addf %363, %365 : vector<8x16xf32>
    %367 = vector.extract_strided_slice %27 {offsets = [0, 0], sizes = [4, 16], strides = [1, 1]} : vector<4x18xf32> to vector<4x16xf32>
    %cst_173 = arith.constant dense<0.000000e+00> : vector<8x16xf32>
    %368 = tpu.matmul %4, %367, %cst_173 {dimension_numbers = #tpu.dot_dimension_numbers<[1], [0], [0], [1], [0, 0, 1, 1], [], []>} : vector<8x4xf32>, vector<4x16xf32>, vector<8x16xf32> -> vector<8x16xf32>
    %369 = arith.addf %366, %368 : vector<8x16xf32>
    %370 = vector.extract_strided_slice %27 {offsets = [0, 1], sizes = [4, 16], strides = [1, 1]} : vector<4x18xf32> to vector<4x16xf32>
    %cst_174 = arith.constant dense<0.000000e+00> : vector<8x16xf32>
    %371 = tpu.matmul %5, %370, %cst_174 {dimension_numbers = #tpu.dot_dimension_numbers<[1], [0], [0], [1], [0, 0, 1, 1], [], []>} : vector<8x4xf32>, vector<4x16xf32>, vector<8x16xf32> -> vector<8x16xf32>
    %372 = arith.addf %369, %371 : vector<8x16xf32>
    %373 = vector.extract_strided_slice %27 {offsets = [0, 2], sizes = [4, 16], strides = [1, 1]} : vector<4x18xf32> to vector<4x16xf32>
    %cst_175 = arith.constant dense<0.000000e+00> : vector<8x16xf32>
    %374 = tpu.matmul %6, %373, %cst_175 {dimension_numbers = #tpu.dot_dimension_numbers<[1], [0], [0], [1], [0, 0, 1, 1], [], []>} : vector<8x4xf32>, vector<4x16xf32>, vector<8x16xf32> -> vector<8x16xf32>
    %375 = arith.addf %372, %374 : vector<8x16xf32>
    %376 = vector.extract_strided_slice %29 {offsets = [0, 0], sizes = [4, 16], strides = [1, 1]} : vector<4x18xf32> to vector<4x16xf32>
    %cst_176 = arith.constant dense<0.000000e+00> : vector<8x16xf32>
    %377 = tpu.matmul %7, %376, %cst_176 {dimension_numbers = #tpu.dot_dimension_numbers<[1], [0], [0], [1], [0, 0, 1, 1], [], []>} : vector<8x4xf32>, vector<4x16xf32>, vector<8x16xf32> -> vector<8x16xf32>
    %378 = arith.addf %375, %377 : vector<8x16xf32>
    %379 = vector.extract_strided_slice %29 {offsets = [0, 1], sizes = [4, 16], strides = [1, 1]} : vector<4x18xf32> to vector<4x16xf32>
    %cst_177 = arith.constant dense<0.000000e+00> : vector<8x16xf32>
    %380 = tpu.matmul %8, %379, %cst_177 {dimension_numbers = #tpu.dot_dimension_numbers<[1], [0], [0], [1], [0, 0, 1, 1], [], []>} : vector<8x4xf32>, vector<4x16xf32>, vector<8x16xf32> -> vector<8x16xf32>
    %381 = arith.addf %378, %380 : vector<8x16xf32>
    %382 = vector.extract_strided_slice %29 {offsets = [0, 2], sizes = [4, 16], strides = [1, 1]} : vector<4x18xf32> to vector<4x16xf32>
    %cst_178 = arith.constant dense<0.000000e+00> : vector<8x16xf32>
    %383 = tpu.matmul %9, %382, %cst_178 {dimension_numbers = #tpu.dot_dimension_numbers<[1], [0], [0], [1], [0, 0, 1, 1], [], []>} : vector<8x4xf32>, vector<4x16xf32>, vector<8x16xf32> -> vector<8x16xf32>
    %384 = arith.addf %381, %383 : vector<8x16xf32>
    %385 = vector.extract_strided_slice %384 {offsets = [0, 0], sizes = [4, 16], strides = [1, 1]} : vector<8x16xf32> to vector<4x16xf32>
    %386 = vector.broadcast %0 : vector<4x1xf32> to vector<4x16xf32>
    %387 = arith.addf %385, %386 : vector<4x16xf32>
    %388 = vector.extract_strided_slice %384 {offsets = [4, 0], sizes = [4, 16], strides = [1, 1]} : vector<8x16xf32> to vector<4x16xf32>
    %389 = vector.broadcast %0 : vector<4x1xf32> to vector<4x16xf32>
    %390 = arith.addf %388, %389 : vector<4x16xf32>
    %391 = arith.addf %387, %390 : vector<4x16xf32>
    %392 = arith.negf %391 : vector<4x16xf32>
    %393 = math.exp %392 : vector<4x16xf32>
    %cst_179 = arith.constant 1.000000e+00 : f32
    %394 = vector.broadcast %cst_179 : f32 to vector<4x16xf32>
    %395 = arith.addf %394, %393 : vector<4x16xf32>
    %396 = arith.divf %394, %395 : vector<4x16xf32>
    %c0_180 = arith.constant 0 : index
    %c0_181 = arith.constant 0 : index
    %c0_182 = arith.constant 0 : index
    %c1_183 = arith.constant 1 : index
    %397 = vector.load %arg3[%c0_180, %c0_181, %c0_182, %c1_183] : memref<1x2x4x18xf32, #tpu.memory_space<vmem>>, vector<1x1x4x16xf32>
    %398 = vector.shape_cast %397 : vector<1x1x4x16xf32> to vector<4x16xf32>
    %399 = arith.addf %398, %390 : vector<4x16xf32>
    %400 = arith.subf %387, %390 : vector<4x16xf32>
    %401 = arith.mulf %396, %400 : vector<4x16xf32>
    %402 = arith.addf %399, %401 : vector<4x16xf32>
    %c0_184 = arith.constant 0 : index
    %c7_185 = arith.constant 7 : index
    %c0_186 = arith.constant 0 : index
    %c0_187 = arith.constant 0 : index
    %403 = vector.load %arg6[%c0_184, %c7_185, %c0_186, %c0_187] : memref<1x8x4x16xf32, #tpu.memory_space<vmem>>, vector<1x1x4x16xf32>
    %404 = vector.shape_cast %403 : vector<1x1x4x16xf32> to vector<4x16xf32>
    %405 = vector.shape_cast %402 : vector<4x16xf32> to vector<1x1x4x16xf32>
    tpu.vector_store %arg6[%c0_184, %c7_185, %c0_186, %c0_187], %405 {strides = array<i32>} : memref<1x8x4x16xf32, #tpu.memory_space<vmem>>, vector<1x1x4x16xf32>,
    return
  }
  func.func @transform_0(%arg0: i32, %arg1: i32) -> (i32, i32, i32, i32) {
    %c0_i32 = arith.constant 0 : i32
    %c0_i32_0 = arith.constant 0 : i32
    %c0_i32_1 = arith.constant 0 : i32
    return %arg0, %arg1, %c0_i32, %c0_i32_0 : i32, i32, i32, i32
  }
  func.func @transform_1(%arg0: i32, %arg1: i32) -> (i32, i32, i32, i32) {
    %c1_i32 = arith.constant 1 : i32
    %0 = arith.addi %arg1, %c1_i32 : i32
    %c4_i32 = arith.constant 4 : i32
    %1 = arith.muli %0, %c4_i32 : i32
    %c0_i32 = arith.constant 0 : i32
    %c0_i32_0 = arith.constant 0 : i32
    %c0_i32_1 = arith.constant 0 : i32
    return %arg0, %1, %c0_i32, %c0_i32_0 : i32, i32, i32, i32
  }
  func.func @transform_2(%arg0: i32, %arg1: i32) -> (i32, i32) {
    %c0_i32 = arith.constant 0 : i32
    %c0_i32_0 = arith.constant 0 : i32
    %c0_i32_1 = arith.constant 0 : i32
    return %c0_i32, %c0_i32_0 : i32, i32
  }
  func.func @transform_3(%arg0: i32, %arg1: i32) -> (i32, i32) {
    %c0_i32 = arith.constant 0 : i32
    %c0_i32_0 = arith.constant 0 : i32
    %c0_i32_1 = arith.constant 0 : i32
    return %c0_i32, %c0_i32_0 : i32, i32
  }
  func.func @transform_4(%arg0: i32, %arg1: i32) -> (i32, i32, i32, i32) {
    %c0_i32 = arith.constant 0 : i32
    %c0_i32_0 = arith.constant 0 : i32
    %c0_i32_1 = arith.constant 0 : i32
    return %arg0, %arg1, %c0_i32, %c0_i32_0 : i32, i32, i32, i32
  }
}

</mosaic_0001>

<bundles_post_ra>
// kernel: tpu_custom_call.1
= control target key start
LH: loop header
LB: loop body
LE: loop exit
PB: predicated region body
PF: predicated region fallthrough
CT: control target
= control target key end

     0   :  { %s8069_s0 = inlined_call_operand.hbm [shape: f32[2,18,4,18], index: 0, kind: input, shape index: {}]   ;;  %s8070_s1 = inlined_call_operand.hbm [shape: f32[2,18,4,18], index: 1, kind: input, shape index: {}]   ;;  %s8071_s2 = inlined_call_operand.vmem [shape: f32[8,36], index: 2, kind: input, shape index: {}]   ;;  %s8072_s3 = inlined_call_operand.vmem [shape: f32[4,1], index: 3, kind: input, shape index: {}]   ;;  %s8073_s4 = inlined_call_operand.hbm [shape: f32[2,16,4,16], index: 4, kind: output, shape index: {}]  }
   0x1   :  { %8085 = sst [smem:[#allocation20_spill]] %s8073_s4 }
   0x2   :  { %9 = vsyncpa [#allocation3], 0 }
   0x3   :  { %11 = vsyncpa [#allocation3 + $0x1], 0 }
   0x4   :  { %12 = vsyncpa [#allocation6], 0 }
   0x5   :  { %14 = vsyncpa [#allocation6 + $0x1], 0 }
   0x6   :  { %15 = vsyncpa [#allocation4], 0 }
   0x7   :  { %17 = vsyncpa [#allocation4 + $0x1], 0  ;;  %s7163_s15 = smov 0   ;;  %s7165_s16 = smov 0  }
   0x8   :  { %s7167_s17 = smov 0   ;;  %s7169_s18 = smov 0  }
   0x9   :  { %s7171_s19 = smov 0   ;;  %s7173_s20 = smov 0  }
   0xa   :  { %s7175_s21 = smov 0   ;;  %s7177_s22 = smov 0  }
   0xb   :  { %s7179_s23 = smov 0   ;;  %s7181_s24 = smov 0  }
   0xc   :  { %s7183_s25 = smov 0  }
   0xd LB: > { %8086 = sst [smem:[#allocation11_spill]] %s7085_s18  ;;  %s8074_s26 = sadd.s32 4294967295, %s7113_s25   ;;  %s7113_s25 = sphi %s7183_s25, %s23_s25   ;;  %s7109_s24 = sphi %s7181_s24, %s8125_s24   ;;  %s7105_s23 = sphi %s7179_s23, %s8124_s23   ;;  %s7101_s22 = sphi %s7177_s22, %s8123_s22   ;;  %s7097_s21 = sphi %s7175_s21, %s8122_s21   ;;  %s7093_s20 = sphi %s7173_s20, %s8114_s20   ;;  %s7089_s19 = sphi %s7171_s19, %s8121_s19   ;;  %s7085_s18 = sphi %s7169_s18, %s8120_s18   ;;  %s7081_s17 = sphi %s7167_s17, %s8119_s17   ;;  %s7077_s16 = sphi %s7165_s16, %s8118_s16   ;;  %s7073_s15 = sphi %s7163_s15, %s8117_s15  }
   0xe   : > { %8087 = sst [smem:[#allocation12_spill]] %s7093_s20  ;;  %s32_s28 = sadd.s32 1, %s7105_s23 }
   0xf   : > { %8088 = sst [smem:[#allocation13_spill]] %s7101_s22  ;;  %s35_s29 = sadd.s32 1, %s7109_s24 }
  0x10   : > { %p33_p0 = scmp.ge.s32.totalorder %s32_s28, 2  ;;  %s44_s30 = sadd.s32 1, %s7093_s20 }
  0x11   : > { %p51_p1 = scmp.ne.s32.totalorder %s7093_s20, %s7089_s19  ;;  %p52_p2 = scmp.eq.s32.totalorder %s7113_s25, 0 }
  0x12   : > { %s8127_s28 = smov (%p33_p0, %s32_s28), 0  ;;  %s8129_s29 = smov (!%p33_p0, %s35_s29), %s7109_s24 }
  0x13   : > { %8089 = sst [smem:[#allocation14_spill]] %s8127_s28  ;;  %s40_s5 = ssub.s32 %s7105_s23, %s8127_s28 }
  0x14   : > { %p7236_p3 = por %p52_p2, %p51_p1  ;;  %p37_p4 = scmp.ge.s32.totalorder %s8129_s29, 2 }
  0x15   : > { %p57_p5 = scmp.ne.s32.totalorder %s7089_s19, %s7085_s18  ;;  %p7244_p6 = scmp.eq.s32.totalorder %s8074_s26, 0 }
  0x16   : > { %s6140_s8 = sshll.u32 %s7105_s23, 2  ;;  %s8131_s29 = smov (%p37_p4, %s8129_s29), 0 }
  0x17   : > { %8092 = sst [smem:[#allocation15_spill]] %s8131_s29  ;;  %p7256_p7 = por %p7244_p6, %p57_p5 }
  0x18   : > { %s6141_s10 = sadd.s32 4, %s6140_s8  ;;  %s39_s11 = ssub.s32 %s7109_s24, %s8131_s29 }
  0x19   : > { %s6142_s12 = sshll.u32 %s8127_s28, 2  ;;  %s41_s13 = sor.u32 %s40_s5, %s39_s11 }
  0x1a   : > { %s6143_s14 = sadd.s32 4, %s6142_s12  ;;  %p42_p8 = scmp.eq.s32.totalorder %s41_s13, 0 }
  0x1b   : > { %s72_s27 = ssub.s32 %s6141_s10, %s6143_s14  ;;  %s76_s4 = sadd.s32 1, %s7081_s17 }
  0x1c   : > { %s73_s26 = sor.u32 %s72_s27, %s39_s11  ;;  %p83_p10 = scmp.ne.s32.totalorder %s7081_s17, %s7077_s16 }
  0x1d   : > { %s7265_s22 = scalar_select %p42_p8, %s7093_s20, %s44_s30  }
  0x1e   : > { %p74_p9 = scmp.eq.s32.totalorder %s73_s26, 0  ;;  %p89_p11 = scmp.ne.s32.totalorder %s7077_s16, %s7073_s15 }
  0x1f   : > { %8094 = sst [smem:[#allocation16_spill]] %s7265_s22  ;;  %s8095_s8 = sadd.s32 4294967295, %s7113_s25  }
  0x20   : > { %p157_p12 = scmp.eq.s32.totalorder %s8095_s8, 3  ;;  %p7278_p13 = por %p83_p10, %p52_p2 }
  0x21   : > { %s7274_s29 = scalar_select %p74_p9, %s7081_s17, %s76_s4  }
  0x22   : > { %p7284_p0 = por %p89_p11, %p7244_p6  ;;  %p7291_p4 = por %p157_p12, %p51_p1 }
  0x23   : > { %8096 = sst [smem:[#allocation17_spill]] %s7274_s29  ;;  %s8101_s15 = sadd.s32 4294967294, %s7113_s25  }
  0x24   : > { %s8098_s5 = scalar_select %p7284_p0, 1, 0 }
  0x25   : > { %s8099_s27 = scalar_select %p7291_p4, 1, 0 }
  0x26   : > { %p163_p8 = scmp.eq.s32.totalorder %s8101_s15, 3  ;;  %p5946_p2 = scmp.ge.s32.totalorder %s7113_s25, 4 }
  0x27   : > { %8100 = sst [smem:[#allocation18_spill]] %s8099_s27 }
  0x28   : > { %p7300_p9 = por %p163_p8, %p57_p5  ;;  %185 = sbr.rel (%p5946_p2) target bundleno = 106 (0x6a), region = 24 }
  0x2a   : > { %s8102_s4 = scalar_select %p7300_p9, 1, 0 }
  0x2c   : > { %8103 = sst [smem:[#allocation19_spill]] %s8102_s4 }
  0x2f   : > { %188 = sbr.rel (!%p7236_p3) target bundleno = 77 (0x4d), region = 28  ;;  %s189_s26 = sand.u32 (%p7236_p3), 1, %s7093_s20  }
  0x30   : > { %s5948_s30 = sshll.u32 (%p7236_p3), %s7105_s23, 3  ;;  %s5947_s7 = sshll.u32 (%p7236_p3), %s189_s26, 5 }
  0x31   : > { %s7309_s10 = scalar_lea.sflag (%p7236_p3), [#allocation3], %s189_s26  ;;  %s193_s11 = scalar_lea.vmem (%p7236_p3), [#allocation2], %s5947_s7 }
  0x32   : > { %s6776_s12 = smul.u32 (%p7236_p3), 18, %s7109_s24  ;;  %s208_s13 = sshll.u32 (%p7236_p3), %s193_s11, 4  ;;  %s7312_s13 = int_to_ptr.vmem [resolvable:$true] %s208_s13 }
  0x33   : > { %s6932_s20 = scalar_lea.hbm (%p7236_p3), %s8069_s0, 2304 }
  0x34   : > { %s204_s14 = sadd.s32 (%p7236_p3), %s6776_s12, %s5948_s30 }
  0x35   : > { %s5951_s8 = sshll.u32 (%p7236_p3), %s204_s14, 6 }
  0x36   : > { %s206_s6 = scalar_lea.hbm %s8069_s0, %s5951_s8 }
  0x37   : > { %s6928_s29 = scalar_lea.hbm %s206_s6, 512  ;;  %p6933_p3 = scmp.lt.u32.totalorder %s206_s6, %s8069_s0 }
  0x38   : > { %p6929_p1 = scmp.ne.s32.totalorder %s206_s6, %s6928_s29  ;;  %p6934_p5 = scmp.lt.u32.totalorder %s6932_s20, %s6928_s29 }
  0x39   : > { %p6936_p10 = scmp.lt.u32.totalorder %s6928_s29, %s206_s6 }
  0x3a   : > { %p6935_p6 = por %p6934_p5, %p6933_p3 }
  0x3c   : > { %p6937_p11 = por %p6936_p10, %p6935_p6 }
  0x3e   : > { %p6938_p12 = pnand %p6937_p11, %p6929_p1 }
  0x40   : > { %6941 = shalt.err (!%p6938_p12)
}
  0x41   : > { %s6942_s22 = scalar_lea.vmem %s7312_s13, 512  ;;  %s7115_s30 = smov [#allocation2]  }
  0x42   : > { %p6943_p8 = scmp.ne.s32.totalorder %s7312_s13, %s6942_s22  ;;  %s6946_s7 = sshll.u32 %s7115_s30, 4  ;;  %s6947_s7 = int_to_ptr.vmem [resolvable:$false] %s6946_s7 }
  0x43   : > { %s6948_s18 = scalar_lea.vmem %s6947_s7, 1024  ;;  %p6949_p2 = scmp.lt.s32.totalorder %s7312_s13, %s6947_s7 }
  0x44   : > { %p6950_p9 = scmp.lt.s32.totalorder %s6948_s18, %s6942_s22 }
  0x46   : > { %p6951_p4 = por %p6950_p9, %p6949_p2 }
  0x48   : > { %p6952_p0 = pnand %p6951_p4, %p6943_p8 }
  0x4a   : > { %6955 = shalt.err (!%p6952_p0)
}
  0x4b   : > { %s7116_s20 = smov 64   ;;  %s7117_s29 = smov 4  }
  0x4c   : > { %214 = dma.hbm_to_vmem [thread:$0]  %s206_s6, 512, %s7312_s13, %s7309_s10, %s7116_s20, %s7116_s20, %s7117_s29  }
  0x4d PF: > { %s218_s27 = sand.u32 1, %s7081_s17   ;;  %s5955_s4 = sshll.u32 %s7105_s23, 3 }
  0x4e   : > { %s5954_s11 = sshll.u32 %s218_s27, 3  ;;  %s5866_s12 = smul.u32 18, %s7109_s24 }
  0x4f   : > { %s222_s14 = scalar_lea.vmem [#allocation5], %s5954_s11  ;;  %s7338_s13 = scalar_lea.sflag [#allocation6], %s218_s27 }
  0x50   : > { %s233_s8 = sshll.u32 %s222_s14, 4  ;;  %s5867_s15 = sadd.s32 %s5955_s4, %s5866_s12  ;;  %s7331_s8 = int_to_ptr.vmem [resolvable:$true] %s233_s8 }
  0x51   : > { %s5956_s26 = sshll.u32 %s5867_s15, 6  ;;  %s6960_s29 = scalar_lea.hbm %s8070_s1, 2304 }
  0x52   : > { %s5869_s7 = scalar_lea.hbm %s8070_s1, %s5956_s26 }
  0x53   : > { %s7336_s10 = scalar_lea.hbm %s5869_s7, 512  ;;  %s6984_s6 = scalar_lea.hbm %s5869_s7, 640 }
  0x54   : > { %p6957_p0 = scmp.ne.s32.totalorder %s7336_s10, %s6984_s6  ;;  %p6961_p1 = scmp.lt.u32.totalorder %s7336_s10, %s8070_s1 }
  0x55   : > { %p6962_p3 = scmp.lt.u32.totalorder %s6960_s29, %s6984_s6  ;;  %p6964_p6 = scmp.lt.u32.totalorder %s6984_s6, %s7336_s10 }
  0x56   : > { %p6958_p4 = pnand %p6957_p0, %p7278_p13 }
  0x57   : > { %p6963_p5 = por %p6962_p3, %p6961_p1 }
  0x58   : > { %p6959_p9 = pneg %p6958_p4 }
  0x59   : > { %p6965_p10 = por %p6964_p6, %p6963_p5 }
  0x5b   : > { %p6966_p11 = pnand %p6965_p10, %p6959_p9 }
  0x5d   : > { %6969 = shalt.err (!%p6966_p11)
}
  0x5e   : > { %s6970_s27 = scalar_lea.vmem %s7331_s8, 128  ;;  %s7118_s12 = smov [#allocation5]  }
  0x5f   : > { %p6971_p12 = scmp.ne.s32.totalorder %s7331_s8, %s6970_s27  ;;  %s6974_s14 = sshll.u32 %s7118_s12, 4  ;;  %s6975_s14 = int_to_ptr.vmem [resolvable:$false] %s6974_s14 }
  0x60   : > { %s6976_s15 = scalar_lea.vmem %s6975_s14, 256  ;;  %p6977_p0 = scmp.lt.s32.totalorder %s7331_s8, %s6975_s14 }
  0x61   : > { %p6972_p8 = pnand %p6971_p12, %p7278_p13  ;;  %p6978_p4 = scmp.lt.s32.totalorder %s6976_s15, %s6970_s27 }
  0x63   : > { %p6973_p2 = pneg %p6972_p8  ;;  %p6979_p1 = por %p6978_p4, %p6977_p0 }
  0x65   : > { %p6980_p3 = pnand %p6979_p1, %p6973_p2 }
  0x67   : > { %6983 = shalt.err (!%p6980_p3)
}
  0x68   : > { %s7119_s26 = smov 64   ;;  %s7120_s22 = smov 4  }
  0x69   : > { %6777 = dma.hbm_to_vmem [thread:$0]  (%p7278_p13), %s7336_s10, 128, %s7331_s8, %s7338_s13, %s7119_s26, %s7119_s26, %s7120_s22  }
  0x6a PF: > { %p5957_p9 = scmp.ge.s32.totalorder %s7113_s25, 1  ;;  %p241_p5 = scmp.lt.s32.totalorder %s7113_s25, 5 }
  0x6c   : > { %p242_p6 = pnand %p5957_p9, %p241_p5 }
  0x6d   : > { %s7364_s30 = sand.u32 (!%p242_p6), 1, %s7089_s19  }
  0x6e   : > { %245 = sbr.rel (%p242_p6) target bundleno = 1006 (0x3ee), region = 36  ;;  %s5958_s7 = sshll.u32 (!%p242_p6), %s7364_s30, 5 }
  0x6f   : > { %s248_s6 = scalar_lea.sflag (!%p242_p6), [#allocation3], %s7364_s30  ;;  %s7370_s18 = scalar_lea.vmem (!%p242_p6), [#allocation2], %s5958_s7 }
  0x75   : > { %7058 = dma.done.wait (%p7256_p7), %s248_s6, 512  }
  0x76   : > { %7060 = vsyncadd (%p7256_p7), %s248_s6, 4294966784  ;;  %s256_s28 = sand.u32 1, %s7077_s16   ;;  %p8104_p13 = scmp.ne.s32.totalorder %s8098_s5, 0 }
  0x77   : > { %s5959_s8 = sshll.u32 %s256_s28, 3  ;;  %s257_s10 = scalar_lea.sflag [#allocation6], %s256_s28 }
  0x78   : > { %s7377_s13 = scalar_lea.vmem [#allocation5], %s5959_s8 }
  0x79   : > { %7062 = dma.done.wait (%p8104_p13), %s257_s10, 128  }
  0x7a   : > { %7064 = vsyncadd (%p8104_p13), %s257_s10, 4294967168  ;;  %v7121_v0 = vmov 0.0   ;;  %vm7122_vm0 = vmmov 0   ;;  %v301_v1 = vld [vmem:[%s7370_s18] sm:$0xf]  ;;  %s7123_s5 = smov 127  }
  0x7b   : > { %6288 = vmatprep.subr.mxu0 %v7121_v0  ;;  %6290 = vmatprep.mubr.msk.f32.mxu0 %vm7122_vm0, %v7121_v0  ;;  %v7393_v2 = vld [vmem:[%s8071_s2] sm:$0xff]  ;;  %s7124_s29 = smov 124   ;;  %s7125_s4 = smov 126   ;;  %v7407_v4 = vld [vmem:[%s7370_s18 + $0x8] sm:$0xf]  ;;  %vm328_vm1 = vcmask 1043456  }
  0x7c   : > { %6333 = vmatprep.subr.mxu1 %v7121_v0  ;;  %6335 = vmatprep.mubr.msk.f32.mxu1 %vm7122_vm0, %v7121_v0  ;;  %v7398_v3 = vld [vmem:[%s7370_s18 + $0x4] sm:$0xf]  ;;  %s7126_s11 = smov 120   ;;  %s7127_s27 = smov 116   ;;  %v7418_v5 = vld [vmem:[%s7370_s18 + $0xc] sm:$0xf] }
  0x7d   : > { %323 = vrot.lane.b32.xlu0 %v301_v1, %s7123_s5  ;;  %320 = vrot.lane.b32.xlu1 %v7393_v2, %s7124_s29  ;;  %s7128_s12 = smov 112   ;;  %s7129_s14 = smov 108   ;;  %v7427_v6 = vld [vmem:[%s7370_s18 + $0x10] sm:$0xf]  ;;  %v7434_v7 = vld [vmem:[%s7370_s18 + $0x14] sm:$0xf] }
  0x7e   : > { %s7130_s15 = smov 104   ;;  %s7131_s26 = smov 100   ;;  %v7441_v8 = vld [vmem:[%s7370_s18 + $0x18] sm:$0xf]  ;;  %v7448_v9 = vld [vmem:[%s7370_s18 + $0x1c] sm:$0xf] }
  0x7f   : > { %s7132_s22 = smov 96   ;;  %v7455_v10 = vld [vmem:[%s7377_s13] sm:$0xf]  ;;  %vm325_vm2 = vcmask 31744   ;;  %v7494_v17 = vld [vmem:[%s7377_s13 + $0x4] sm:$0xf] }
  0x80   : > { %v299_v18 = vld [vmem:[%s8072_s3] sm:$0xf]  ;;  %v7133_v19 = vmov 0   ;;  %s7134_s8 = smov 1   ;;  %vm1060_vm3 = vcmask 125952   ;;  %s8105_s10 = sld [smem:[#allocation13_spill]] }
  0x81   : > { %634 = vrot.lane.b32.xlu0 %v7398_v3, %s7123_s5  ;;  %477 = vrot.lane.b32.xlu1 %v301_v1, %s7125_s4  ;;  %s289_s9 = scalar_lea.vmem [#allocation7], %s5958_s7  ;;  %s8106_s7 = sld [smem:[#allocation18_spill]] }
  0x82   : > { %6895 = vset.pattern.permute.xlu0 %v7133_v19 }
  0x85   : > { %713 = vrot.lane.b32.xlu0 %v7398_v3, %s7125_s4  ;;  %475 = vrot.lane.b32.xlu1 %v7393_v2, %s7126_s11 }
  0x87   : > { %p8108_p10 = scmp.ne.s32.totalorder %s8106_s7, 0 }
  0x89   : > { %554 = vrot.lane.b32.xlu0 %v7393_v2, %s7127_s27  ;;  %870 = vrot.lane.b32.xlu1 %v7407_v4, %s7123_s5  ;;  %s8107_s27 = sld [smem:[#allocation20_spill]] }
  0x8d   : > { %632 = vrot.lane.b32.xlu0 %v7393_v2, %s7128_s12  ;;  %949 = vrot.lane.b32.xlu1 %v7407_v4, %s7125_s4 }
  0x91   : > { %711 = vrot.lane.b32.xlu0 %v7393_v2, %s7129_s14  ;;  %790 = vrot.lane.b32.xlu1 %v7393_v2, %s7130_s15  ;;  %s7135_s15 = smov [#allocation7]  }
  0x95   : > { %1560 = vrot.lane.b32.xlu0 %v7418_v5, %s7123_s5  ;;  %868 = vrot.lane.b32.xlu1 %v7393_v2, %s7131_s26  ;;  %s6989_s26 = sshll.u32 %s7135_s15, 4  ;;  %s6990_s26 = int_to_ptr.vmem [resolvable:$false] %s6989_s26 }
  0x99   : > { %1635 = vrot.lane.b32.xlu0 %v7418_v5, %s7125_s4  ;;  %947 = vrot.lane.b32.xlu1 %v7393_v2, %s7132_s22  ;;  %s6991_s22 = scalar_lea.vmem %s6990_s26, 1024 }
  0x9d   : > { %2238 = vrot.lane.b32.xlu0 %v7427_v6, %s7123_s5  ;;  %2313 = vrot.lane.b32.xlu1 %v7427_v6, %s7125_s4 }
  0xa1   : > { %2916 = vrot.lane.b32.xlu0 %v7434_v7, %s7123_s5  ;;  %2991 = vrot.lane.b32.xlu1 %v7434_v7, %s7125_s4 }
  0xa5   : > { %3594 = vrot.lane.b32.xlu0 %v7441_v8, %s7123_s5  ;;  %3669 = vrot.lane.b32.xlu1 %v7441_v8, %s7125_s4 }
  0xa9   : > { %4272 = vrot.lane.b32.xlu0 %v7448_v9, %s7123_s5  ;;  %4347 = vrot.lane.b32.xlu1 %v7448_v9, %s7125_s4 }
  0xad   : > { %4950 = vrot.lane.b32.xlu0 %v7455_v10, %s7123_s5  ;;  %5025 = vrot.lane.b32.xlu1 %v7455_v10, %s7125_s4 }
  0xb1   : > { %5628 = vrot.lane.b32.xlu0 %v7494_v17, %s7123_s5  ;;  %5703 = vrot.lane.b32.xlu1 %v7494_v17, %s7125_s4 }
  0xb5   : > { %1028 = vperm.xlu0 %6895, %v299_v18  }
  0xef   : > { %v324_v11 = vpop.permute.xlu0 %323  ;;  %v7461_v12 = vpop.permute.xlu1 %320 }
  0xf0   : > { %6289 = vmatpush3.msk.msra.mxu0 %vm328_vm1, %v324_v11 }
  0xf1   : > { %6291 = vmatmul.mubr.msk.f32.vlgmr.msra.gmra.mrb[0].mxu0 %vm325_vm2, %v7461_v12  ;;  %6293 = vmatprep.subr.mxu0 %v7121_v0 }
  0xf2   : > { %6294 = vmatpush3.msk.msra.mxu0 %vm328_vm1, %v301_v1  ;;  %6295 = vmatprep.mubr.msk.f32.mxu0 %vm7122_vm0, %v7121_v0 }
  0xf3   : > { %v635_v13 = vpop.permute.xlu0 %634  ;;  %6298 = vmatprep.subr.mxu0 %v7121_v0  ;;  %v478_v14 = vpop.permute.xlu1 %477 }
  0xf4   : > { %6334 = vmatpush3.msk.msra.mxu1 %vm328_vm1, %v635_v13 }
  0xf5   : > { %6336 = vmatmul.mubr.msk.f32.vlgmr.msra.gmra.mrb[0].mxu1 %vm325_vm2, %v7461_v12  ;;  %6338 = vmatprep.subr.mxu1 %v7121_v0 }
  0xf6   : > { %6339 = vmatpush3.msk.msra.mxu1 %vm328_vm1, %v7398_v3  ;;  %6340 = vmatprep.mubr.msk.f32.mxu1 %vm7122_vm0, %v7121_v0 }
  0xf7   : > { %6343 = vmatprep.subr.mxu1 %v7121_v0  ;;  %v714_v15 = vpop.permute.xlu0 %713  ;;  %v7489_v16 = vpop.permute.xlu1 %475 }
  0xf9   : > { %6296 = vmatmul.mubr.msk.f32.vlgmr.msra.gmra.mrb[0].mxu0 %vm325_vm2, %v7393_v2 }
  0xfa   : > { %6299 = vmatpush3.msk.msra.mxu0 %vm328_vm1, %v478_v14  ;;  %6300 = vmatprep.mubr.msk.f32.mxu0 %vm7122_vm0, %v7121_v0 }
  0xfb   : > { %6303 = vmatprep.subr.mxu0 %v7121_v0  ;;  %v7515_v20 = vpop.permute.xlu0 %554  ;;  %v871_v21 = vpop.permute.xlu1 %870 }
  0xfd   : > { %6341 = vmatmul.mubr.msk.f32.vlgmr.msra.gmra.mrb[0].mxu1 %vm325_vm2, %v7393_v2 }
  0xfe   : > { %6344 = vmatpush3.msk.msra.mxu1 %vm328_vm1, %v714_v15  ;;  %6345 = vmatprep.mubr.msk.f32.mxu1 %vm7122_vm0, %v7121_v0 }
  0xff   : > { %6348 = vmatprep.subr.mxu1 %v7121_v0  ;;  %v7529_v22 = vpop.permute.xlu0 %632  ;;  %v950_v23 = vpop.permute.xlu1 %949 }
 0x101   : > { %6301 = vmatmul.mubr.msk.f32.vlgmr.msra.gmra.mrb[0].mxu0 %vm325_vm2, %v7489_v16 }
 0x102   : > { %6304 = vmatpush3.msk.msra.mxu0 %vm328_vm1, %v7398_v3  ;;  %6305 = vmatprep.mubr.msk.f32.mxu0 %vm7122_vm0, %v7121_v0 }
 0x103   : > { %6308 = vmatprep.subr.mxu0 %v7121_v0  ;;  %v7543_v24 = vpop.permute.xlu0 %711  ;;  %v7559_v25 = vpop.permute.xlu1 %790 }
 0x105   : > { %6346 = vmatmul.mubr.msk.f32.vlgmr.msra.gmra.mrb[0].mxu1 %vm325_vm2, %v7489_v16 }
 0x106   : > { %6349 = vmatpush3.msk.msra.mxu1 %vm328_vm1, %v7407_v4  ;;  %6350 = vmatprep.mubr.msk.f32.mxu1 %vm7122_vm0, %v7121_v0 }
 0x107   : > { %6353 = vmatprep.subr.mxu1 %v7121_v0  ;;  %v1561_v26 = vpop.permute.xlu0 %1560  ;;  %v7573_v27 = vpop.permute.xlu1 %868 }
 0x109   : > { %6306 = vmatmul.mubr.msk.f32.vlgmr.msra.gmra.mrb[0].mxu0 %vm325_vm2, %v7515_v20 }
 0x10a   : > { %6309 = vmatpush3.msk.msra.mxu0 %vm328_vm1, %v635_v13  ;;  %6310 = vmatprep.mubr.msk.f32.mxu0 %vm7122_vm0, %v7121_v0 }
 0x10b   : > { %6313 = vmatprep.subr.mxu0 %v7121_v0  ;;  %v1636_v28 = vpop.permute.xlu0 %1635  ;;  %v7587_v29 = vpop.permute.xlu1 %947 }
 0x10d   : > { %6351 = vmatmul.mubr.msk.f32.vlgmr.msra.gmra.mrb[0].mxu1 %vm325_vm2, %v7515_v20 }
 0x10e   : > { %6354 = vmatpush3.msk.msra.mxu1 %vm328_vm1, %v871_v21  ;;  %6355 = vmatprep.mubr.msk.f32.mxu1 %vm7122_vm0, %v7121_v0 }
 0x10f   : > { %6358 = vmatprep.subr.mxu1 %v7121_v0  ;;  %v2239_v30 = vpop.permute.xlu0 %2238  ;;  %v2314_v31 = vpop.permute.xlu1 %2313 }
 0x111   : > { %6311 = vmatmul.mubr.msk.f32.vlgmr.msra.gmra.mrb[0].mxu0 %vm325_vm2, %v7529_v22 }
 0x112   : > { %6314 = vmatpush3.msk.msra.mxu0 %vm328_vm1, %v714_v15  ;;  %6315 = vmatprep.mubr.msk.f32.mxu0 %vm7122_vm0, %v7121_v0 }
 0x113   : > { %6318 = vmatprep.subr.mxu0 %v7121_v0  ;;  %v2917_v32 = vpop.permute.xlu0 %2916  ;;  %v2992_v33 = vpop.permute.xlu1 %2991 }
 0x115   : > { %6356 = vmatmul.mubr.msk.f32.vlgmr.msra.gmra.mrb[0].mxu1 %vm325_vm2, %v7529_v22 }
 0x116   : > { %6359 = vmatpush3.msk.msra.mxu1 %vm328_vm1, %v950_v23  ;;  %6360 = vmatprep.mubr.msk.f32.mxu1 %vm7122_vm0, %v7121_v0 }
 0x117   : > { %6363 = vmatprep.subr.mxu1 %v7121_v0  ;;  %v3595_v34 = vpop.permute.xlu0 %3594  ;;  %v3670_v35 = vpop.permute.xlu1 %3669 }
 0x119   : > { %6316 = vmatmul.mubr.msk.f32.vlgmr.msra.gmra.mrb[0].mxu0 %vm325_vm2, %v7543_v24 }
 0x11a   : > { %6319 = vmatpush3.msk.msra.mxu0 %vm328_vm1, %v7407_v4  ;;  %6320 = vmatprep.mubr.msk.f32.mxu0 %vm7122_vm0, %v7121_v0 }
 0x11b   : > { %6323 = vmatprep.subr.mxu0 %v7121_v0  ;;  %v4273_v36 = vpop.permute.xlu0 %4272  ;;  %v4348_v37 = vpop.permute.xlu1 %4347 }
 0x11d   : > { %6361 = vmatmul.mubr.msk.f32.vlgmr.msra.gmra.mrb[0].mxu1 %vm325_vm2, %v7543_v24 }
 0x11e   : > { %6364 = vmatpush3.msk.msra.mxu1 %vm328_vm1, %v7418_v5  ;;  %6365 = vmatprep.mubr.msk.f32.mxu1 %vm7122_vm0, %v7121_v0 }
 0x11f   : > { %6368 = vmatprep.subr.mxu1 %v7121_v0  ;;  %v4951_v38 = vpop.permute.xlu0 %4950  ;;  %v5026_v39 = vpop.permute.xlu1 %5025 }
 0x121   : > { %6321 = vmatmul.mubr.msk.f32.vlgmr.msra.gmra.mrb[0].mxu0 %vm325_vm2, %v7559_v25 }
 0x122   : > { %6324 = vmatpush3.msk.msra.mxu0 %vm328_vm1, %v871_v21  ;;  %6325 = vmatprep.mubr.msk.f32.mxu0 %vm7122_vm0, %v7121_v0 }
 0x123   : > { %6328 = vmatprep.subr.mxu0 %v7121_v0  ;;  %v5629_v40 = vpop.permute.xlu0 %5628  ;;  %v5704_v41 = vpop.permute.xlu1 %5703 }
 0x125   : > { %6366 = vmatmul.mubr.msk.f32.vlgmr.msra.gmra.mrb[0].mxu1 %vm325_vm2, %v7559_v25 }
 0x126   : > { %6369 = vmatpush3.msk.msra.mxu1 %vm328_vm1, %v1561_v26  ;;  %6370 = vmatprep.mubr.msk.f32.mxu1 %vm7122_vm0, %v7121_v0 }
 0x127   : > { %6373 = vmatprep.subr.mxu1 %v7121_v0 }
 0x129   : > { %6326 = vmatmul.mubr.msk.f32.vlgmr.msra.gmra.mrb[0].mxu0 %vm325_vm2, %v7573_v27 }
 0x12a   : > { %6329 = vmatpush3.msk.msra.mxu0 %vm328_vm1, %v950_v23  ;;  %6330 = vmatprep.mubr.msk.f32.mxu0 %vm7122_vm0, %v7121_v0 }
 0x12b   : > { %6378 = vmatprep.subr.mxu0 %v7121_v0 }
 0x12d   : > { %6371 = vmatmul.mubr.msk.f32.vlgmr.msra.gmra.mrb[0].mxu1 %vm325_vm2, %v7573_v27 }
 0x12e   : > { %6374 = vmatpush3.msk.msra.mxu1 %vm328_vm1, %v1636_v28  ;;  %6375 = vmatprep.mubr.msk.f32.mxu1 %vm7122_vm0, %v7121_v0 }
 0x12f   : > { %6423 = vmatprep.subr.mxu1 %v7121_v0 }
 0x131   : > { %6331 = vmatmul.mubr.msk.f32.vlgmr.msra.gmra.mrb[0].mxu0 %vm325_vm2, %v7587_v29 }
 0x132   : > { %6379 = vmatpush3.msk.msra.mxu0 %vm328_vm1, %v871_v21  ;;  %6380 = vmatprep.mubr.msk.f32.mxu0 %vm7122_vm0, %v7121_v0 }
 0x133   : > { %6383 = vmatprep.subr.mxu0 %v7121_v0 }
 0x134   : > { %v7934_v42 = vpop.permute.xlu0 %1028 }
 0x135   : > { %6376 = vmatmul.mubr.msk.f32.vlgmr.msra.gmra.mrb[0].mxu1 %vm325_vm2, %v7587_v29  ;;  %6381 = vmatmul.mubr.msk.f32.vlgmr.msra.gmra.mrb[2].mxu0 %vm325_vm2, %v7461_v12  ;;  %v7939_v43 = vrot.slane %v7934_v42, 4 }
 0x136   : > { %6424 = vmatpush3.msk.msra.mxu1 %vm328_vm1, %v1561_v26  ;;  %6425 = vmatprep.mubr.msk.f32.mxu1 %vm7122_vm0, %v7121_v0 }
 0x137   : > { %6428 = vmatprep.subr.mxu1 %v7121_v0  ;;  %6384 = vmatpush3.msk.msra.mxu0 %vm328_vm1, %v7407_v4 }
 0x138   : > { %6385 = vmatprep.mubr.msk.f32.mxu0 %vm7122_vm0, %v7121_v0  ;;  %6388 = vmatprep.subr.mxu0 %v7121_v0 }
 0x139   : > { %6426 = vmatmul.mubr.msk.f32.vlgmr.msra.gmra.mrb[2].mxu1 %vm325_vm2, %v7461_v12 }
 0x13a   : > { %6429 = vmatpush3.msk.msra.mxu1 %vm328_vm1, %v7418_v5  ;;  %6430 = vmatprep.mubr.msk.f32.mxu1 %vm7122_vm0, %v7121_v0 }
 0x13b   : > { %6433 = vmatprep.subr.mxu1 %v7121_v0 }
 0x13d   : > { %6386 = vmatmul.mubr.msk.f32.vlgmr.msra.gmra.mrb[2].mxu0 %vm325_vm2, %v7393_v2 }
 0x13e   : > { %6389 = vmatpush3.msk.msra.mxu0 %vm328_vm1, %v950_v23  ;;  %6390 = vmatprep.mubr.msk.f32.mxu0 %vm7122_vm0, %v7121_v0 }
 0x13f   : > { %6393 = vmatprep.subr.mxu0 %v7121_v0 }
 0x141   : > { %6431 = vmatmul.mubr.msk.f32.vlgmr.msra.gmra.mrb[2].mxu1 %vm325_vm2, %v7393_v2 }
 0x142   : > { %6434 = vmatpush3.msk.msra.mxu1 %vm328_vm1, %v1636_v28  ;;  %6435 = vmatprep.mubr.msk.f32.mxu1 %vm7122_vm0, %v7121_v0 }
 0x143   : > { %6438 = vmatprep.subr.mxu1 %v7121_v0 }
 0x145   : > { %6391 = vmatmul.mubr.msk.f32.vlgmr.msra.gmra.mrb[2].mxu0 %vm325_vm2, %v7489_v16 }
 0x146   : > { %6394 = vmatpush3.msk.msra.mxu0 %vm328_vm1, %v7418_v5  ;;  %6395 = vmatprep.mubr.msk.f32.mxu0 %vm7122_vm0, %v7121_v0 }
 0x147   : > { %6398 = vmatprep.subr.mxu0 %v7121_v0 }
 0x149   : > { %6436 = vmatmul.mubr.msk.f32.vlgmr.msra.gmra.mrb[2].mxu1 %vm325_vm2, %v7489_v16 }
 0x14a   : > { %6439 = vmatpush3.msk.msra.mxu1 %vm328_vm1, %v7427_v6  ;;  %6440 = vmatprep.mubr.msk.f32.mxu1 %vm7122_vm0, %v7121_v0 }
 0x14b   : > { %6443 = vmatprep.subr.mxu1 %v7121_v0 }
 0x14d   : > { %6396 = vmatmul.mubr.msk.f32.vlgmr.msra.gmra.mrb[2].mxu0 %vm325_vm2, %v7515_v20 }
 0x14e   : > { %6399 = vmatpush3.msk.msra.mxu0 %vm328_vm1, %v1561_v26  ;;  %6400 = vmatprep.mubr.msk.f32.mxu0 %vm7122_vm0, %v7121_v0 }
 0x14f   : > { %6403 = vmatprep.subr.mxu0 %v7121_v0 }
 0x151   : > { %6441 = vmatmul.mubr.msk.f32.vlgmr.msra.gmra.mrb[2].mxu1 %vm325_vm2, %v7515_v20 }
 0x152   : > { %6444 = vmatpush3.msk.msra.mxu1 %vm328_vm1, %v2239_v30  ;;  %6445 = vmatprep.mubr.msk.f32.mxu1 %vm7122_vm0, %v7121_v0 }
 0x153   : > { %6448 = vmatprep.subr.mxu1 %v7121_v0 }
 0x155   : > { %6401 = vmatmul.mubr.msk.f32.vlgmr.msra.gmra.mrb[2].mxu0 %vm325_vm2, %v7529_v22 }
 0x156   : > { %6404 = vmatpush3.msk.msra.mxu0 %vm328_vm1, %v1636_v28  ;;  %6405 = vmatprep.mubr.msk.f32.mxu0 %vm7122_vm0, %v7121_v0 }
 0x157   : > { %6408 = vmatprep.subr.mxu0 %v7121_v0 }
 0x159   : > { %6446 = vmatmul.mubr.msk.f32.vlgmr.msra.gmra.mrb[2].mxu1 %vm325_vm2, %v7529_v22 }
 0x15a   : > { %6449 = vmatpush3.msk.msra.mxu1 %vm328_vm1, %v2314_v31  ;;  %6450 = vmatprep.mubr.msk.f32.mxu1 %vm7122_vm0, %v7121_v0 }
 0x15b   : > { %6453 = vmatprep.subr.mxu1 %v7121_v0 }
 0x15d   : > { %6406 = vmatmul.mubr.msk.f32.vlgmr.msra.gmra.mrb[2].mxu0 %vm325_vm2, %v7543_v24 }
 0x15e   : > { %6409 = vmatpush3.msk.msra.mxu0 %vm328_vm1, %v7427_v6  ;;  %6410 = vmatprep.mubr.msk.f32.mxu0 %vm7122_vm0, %v7121_v0 }
 0x15f   : > { %6413 = vmatprep.subr.mxu0 %v7121_v0 }
 0x161   : > { %6451 = vmatmul.mubr.msk.f32.vlgmr.msra.gmra.mrb[2].mxu1 %vm325_vm2, %v7543_v24 }
 0x162   : > { %6454 = vmatpush3.msk.msra.mxu1 %vm328_vm1, %v7434_v7  ;;  %6455 = vmatprep.mubr.msk.f32.mxu1 %vm7122_vm0, %v7121_v0 }
 0x163   : > { %6458 = vmatprep.subr.mxu1 %v7121_v0 }
 0x165   : > { %6411 = vmatmul.mubr.msk.f32.vlgmr.msra.gmra.mrb[2].mxu0 %vm325_vm2, %v7559_v25 }
 0x166   : > { %6414 = vmatpush3.msk.msra.mxu0 %vm328_vm1, %v2239_v30  ;;  %6415 = vmatprep.mubr.msk.f32.mxu0 %vm7122_vm0, %v7121_v0 }
 0x167   : > { %6418 = vmatprep.subr.mxu0 %v7121_v0 }
 0x169   : > { %6456 = vmatmul.mubr.msk.f32.vlgmr.msra.gmra.mrb[2].mxu1 %vm325_vm2, %v7559_v25 }
 0x16a   : > { %6459 = vmatpush3.msk.msra.mxu1 %vm328_vm1, %v2917_v32  ;;  %6460 = vmatprep.mubr.msk.f32.mxu1 %vm7122_vm0, %v7121_v0 }
 0x16b   : > { %6463 = vmatprep.subr.mxu1 %v7121_v0 }
 0x16d   : > { %6416 = vmatmul.mubr.msk.f32.vlgmr.msra.gmra.mrb[2].mxu0 %vm325_vm2, %v7573_v27 }
 0x16e   : > { %6419 = vmatpush3.msk.msra.mxu0 %vm328_vm1, %v2314_v31  ;;  %6420 = vmatprep.mubr.msk.f32.mxu0 %vm7122_vm0, %v7121_v0 }
 0x16f   : > { %6468 = vmatprep.subr.mxu0 %v7121_v0 }
 0x171   : > { %6461 = vmatmul.mubr.msk.f32.vlgmr.msra.gmra.mrb[2].mxu1 %vm325_vm2, %v7573_v27 }
 0x172   : > { %6464 = vmatpush3.msk.msra.mxu1 %vm328_vm1, %v2992_v33  ;;  %6465 = vmatprep.mubr.msk.f32.mxu1 %vm7122_vm0, %v7121_v0 }
 0x173   : > { %6513 = vmatprep.subr.mxu1 %v7121_v0 }
 0x175   : > { %6421 = vmatmul.mubr.msk.f32.vlgmr.msra.gmra.mrb[2].mxu0 %vm325_vm2, %v7587_v29 }
 0x176   : > { %6469 = vmatpush3.msk.msra.mxu0 %vm328_vm1, %v2239_v30  ;;  %6470 = vmatprep.mubr.msk.f32.mxu0 %vm7122_vm0, %v7121_v0 }
 0x177   : > { %6473 = vmatprep.subr.mxu0 %v7121_v0 }
 0x179   : > { %6466 = vmatmul.mubr.msk.f32.vlgmr.msra.gmra.mrb[2].mxu1 %vm325_vm2, %v7587_v29  ;;  %6471 = vmatmul.mubr.msk.f32.vlgmr.msra.gmra.mrb[4].mxu0 %vm325_vm2, %v7461_v12 }
 0x17a   : > { %6514 = vmatpush3.msk.msra.mxu1 %vm328_vm1, %v2917_v32  ;;  %6515 = vmatprep.mubr.msk.f32.mxu1 %vm7122_vm0, %v7121_v0 }
 0x17b   : > { %6518 = vmatprep.subr.mxu1 %v7121_v0  ;;  %6474 = vmatpush3.msk.msra.mxu0 %vm328_vm1, %v7427_v6 }
 0x17c   : > { %6475 = vmatprep.mubr.msk.f32.mxu0 %vm7122_vm0, %v7121_v0  ;;  %6478 = vmatprep.subr.mxu0 %v7121_v0 }
 0x17d   : > { %6516 = vmatmul.mubr.msk.f32.vlgmr.msra.gmra.mrb[4].mxu1 %vm325_vm2, %v7461_v12 }
 0x17e   : > { %6519 = vmatpush3.msk.msra.mxu1 %vm328_vm1, %v7434_v7  ;;  %6520 = vmatprep.mubr.msk.f32.mxu1 %vm7122_vm0, %v7121_v0 }
 0x17f   : > { %6523 = vmatprep.subr.mxu1 %v7121_v0 }
 0x181   : > { %6476 = vmatmul.mubr.msk.f32.vlgmr.msra.gmra.mrb[4].mxu0 %vm325_vm2, %v7393_v2 }
 0x182   : > { %6479 = vmatpush3.msk.msra.mxu0 %vm328_vm1, %v2314_v31  ;;  %6480 = vmatprep.mubr.msk.f32.mxu0 %vm7122_vm0, %v7121_v0 }
 0x183   : > { %6483 = vmatprep.subr.mxu0 %v7121_v0 }
 0x185   : > { %6521 = vmatmul.mubr.msk.f32.vlgmr.msra.gmra.mrb[4].mxu1 %vm325_vm2, %v7393_v2 }
 0x186   : > { %6524 = vmatpush3.msk.msra.mxu1 %vm328_vm1, %v2992_v33  ;;  %6525 = vmatprep.mubr.msk.f32.mxu1 %vm7122_vm0, %v7121_v0 }
 0x187   : > { %6528 = vmatprep.subr.mxu1 %v7121_v0 }
 0x189   : > { %6481 = vmatmul.mubr.msk.f32.vlgmr.msra.gmra.mrb[4].mxu0 %vm325_vm2, %v7489_v16 }
 0x18a   : > { %6484 = vmatpush3.msk.msra.mxu0 %vm328_vm1, %v7434_v7  ;;  %6485 = vmatprep.mubr.msk.f32.mxu0 %vm7122_vm0, %v7121_v0 }
 0x18b   : > { %6488 = vmatprep.subr.mxu0 %v7121_v0 }
 0x18d   : > { %6526 = vmatmul.mubr.msk.f32.vlgmr.msra.gmra.mrb[4].mxu1 %vm325_vm2, %v7489_v16 }
 0x18e   : > { %6529 = vmatpush3.msk.msra.mxu1 %vm328_vm1, %v7441_v8  ;;  %6530 = vmatprep.mubr.msk.f32.mxu1 %vm7122_vm0, %v7121_v0 }
 0x18f   : > { %6533 = vmatprep.subr.mxu1 %v7121_v0 }
 0x191   : > { %6486 = vmatmul.mubr.msk.f32.vlgmr.msra.gmra.mrb[4].mxu0 %vm325_vm2, %v7515_v20 }
 0x192   : > { %6489 = vmatpush3.msk.msra.mxu0 %vm328_vm1, %v2917_v32  ;;  %6490 = vmatprep.mubr.msk.f32.mxu0 %vm7122_vm0, %v7121_v0 }
 0x193   : > { %6493 = vmatprep.subr.mxu0 %v7121_v0 }
 0x195   : > { %6531 = vmatmul.mubr.msk.f32.vlgmr.msra.gmra.mrb[4].mxu1 %vm325_vm2, %v7515_v20 }
 0x196   : > { %6534 = vmatpush3.msk.msra.mxu1 %vm328_vm1, %v3595_v34  ;;  %6535 = vmatprep.mubr.msk.f32.mxu1 %vm7122_vm0, %v7121_v0 }
 0x197   : > { %6538 = vmatprep.subr.mxu1 %v7121_v0 }
 0x199   : > { %6491 = vmatmul.mubr.msk.f32.vlgmr.msra.gmra.mrb[4].mxu0 %vm325_vm2, %v7529_v22 }
 0x19a   : > { %6494 = vmatpush3.msk.msra.mxu0 %vm328_vm1, %v2992_v33  ;;  %6495 = vmatprep.mubr.msk.f32.mxu0 %vm7122_vm0, %v7121_v0 }
 0x19b   : > { %6498 = vmatprep.subr.mxu0 %v7121_v0 }
 0x19d   : > { %6536 = vmatmul.mubr.msk.f32.vlgmr.msra.gmra.mrb[4].mxu1 %vm325_vm2, %v7529_v22 }
 0x19e   : > { %6539 = vmatpush3.msk.msra.mxu1 %vm328_vm1, %v3670_v35  ;;  %6540 = vmatprep.mubr.msk.f32.mxu1 %vm7122_vm0, %v7121_v0 }
 0x19f   : > { %6543 = vmatprep.subr.mxu1 %v7121_v0 }
 0x1a1   : > { %6496 = vmatmul.mubr.msk.f32.vlgmr.msra.gmra.mrb[4].mxu0 %vm325_vm2, %v7543_v24 }
 0x1a2   : > { %6499 = vmatpush3.msk.msra.mxu0 %vm328_vm1, %v7441_v8  ;;  %6500 = vmatprep.mubr.msk.f32.mxu0 %vm7122_vm0, %v7121_v0 }
 0x1a3   : > { %6503 = vmatprep.subr.mxu0 %v7121_v0 }
 0x1a5   : > { %6541 = vmatmul.mubr.msk.f32.vlgmr.msra.gmra.mrb[4].mxu1 %vm325_vm2, %v7543_v24 }
 0x1a6   : > { %6544 = vmatpush3.msk.msra.mxu1 %vm328_vm1, %v7448_v9  ;;  %6545 = vmatprep.mubr.msk.f32.mxu1 %vm7122_vm0, %v7121_v0 }
 0x1a7   : > { %6548 = vmatprep.subr.mxu1 %v7121_v0 }
 0x1a9   : > { %6501 = vmatmul.mubr.msk.f32.vlgmr.msra.gmra.mrb[4].mxu0 %vm325_vm2, %v7559_v25 }
 0x1aa   : > { %6504 = vmatpush3.msk.msra.mxu0 %vm328_vm1, %v3595_v34  ;;  %6505 = vmatprep.mubr.msk.f32.mxu0 %vm7122_vm0, %v7121_v0 }
 0x1ab   : > { %6508 = vmatprep.subr.mxu0 %v7121_v0 }
 0x1ad   : > { %6546 = vmatmul.mubr.msk.f32.vlgmr.msra.gmra.mrb[4].mxu1 %vm325_vm2, %v7559_v25 }
 0x1ae   : > { %6549 = vmatpush3.msk.msra.mxu1 %vm328_vm1, %v4273_v36  ;;  %6550 = vmatprep.mubr.msk.f32.mxu1 %vm7122_vm0, %v7121_v0 }
 0x1af   : > { %6553 = vmatprep.subr.mxu1 %v7121_v0 }
 0x1b1   : > { %6506 = vmatmul.mubr.msk.f32.vlgmr.msra.gmra.mrb[4].mxu0 %vm325_vm2, %v7573_v27 }
 0x1b2   : > { %6509 = vmatpush3.msk.msra.mxu0 %vm328_vm1, %v3670_v35  ;;  %6510 = vmatprep.mubr.msk.f32.mxu0 %vm7122_vm0, %v7121_v0 }
 0x1b3   : > { %6558 = vmatprep.subr.mxu0 %v7121_v0 }
 0x1b5   : > { %6551 = vmatmul.mubr.msk.f32.vlgmr.msra.gmra.mrb[4].mxu1 %vm325_vm2, %v7573_v27 }
 0x1b6   : > { %6554 = vmatpush3.msk.msra.mxu1 %vm328_vm1, %v4348_v37  ;;  %6555 = vmatprep.mubr.msk.f32.mxu1 %vm7122_vm0, %v7121_v0 }
 0x1b7   : > { %6603 = vmatprep.subr.mxu1 %v7121_v0 }
 0x1b9   : > { %6511 = vmatmul.mubr.msk.f32.vlgmr.msra.gmra.mrb[4].mxu0 %vm325_vm2, %v7587_v29 }
 0x1ba   : > { %6559 = vmatpush3.msk.msra.mxu0 %vm328_vm1, %v3595_v34  ;;  %6560 = vmatprep.mubr.msk.f32.mxu0 %vm7122_vm0, %v7121_v0 }
 0x1bb   : > { %6563 = vmatprep.subr.mxu0 %v7121_v0 }
 0x1bd   : > { %6556 = vmatmul.mubr.msk.f32.vlgmr.msra.gmra.mrb[4].mxu1 %vm325_vm2, %v7587_v29  ;;  %6561 = vmatmul.mubr.msk.f32.vlgmr.msra.gmra.mrb[6].mxu0 %vm325_vm2, %v7461_v12 }
 0x1be   : > { %6604 = vmatpush3.msk.msra.mxu1 %vm328_vm1, %v4273_v36  ;;  %6605 = vmatprep.mubr.msk.f32.mxu1 %vm7122_vm0, %v7121_v0 }
 0x1bf   : > { %6608 = vmatprep.subr.mxu1 %v7121_v0  ;;  %6564 = vmatpush3.msk.msra.mxu0 %vm328_vm1, %v7441_v8 }
 0x1c0   : > { %6565 = vmatprep.mubr.msk.f32.mxu0 %vm7122_vm0, %v7121_v0  ;;  %6568 = vmatprep.subr.mxu0 %v7121_v0 }
 0x1c1   : > { %6606 = vmatmul.mubr.msk.f32.vlgmr.msra.gmra.mrb[6].mxu1 %vm325_vm2, %v7461_v12 }
 0x1c2   : > { %6609 = vmatpush3.msk.msra.mxu1 %vm328_vm1, %v7448_v9  ;;  %6610 = vmatprep.mubr.msk.f32.mxu1 %vm7122_vm0, %v7121_v0 }
 0x1c3   : > { %6613 = vmatprep.subr.mxu1 %v7121_v0 }
 0x1c5   : > { %6566 = vmatmul.mubr.msk.f32.vlgmr.msra.gmra.mrb[6].mxu0 %vm325_vm2, %v7393_v2 }
 0x1c6   : > { %6569 = vmatpush3.msk.msra.mxu0 %vm328_vm1, %v3670_v35  ;;  %6570 = vmatprep.mubr.msk.f32.mxu0 %vm7122_vm0, %v7121_v0 }
 0x1c7   : > { %6573 = vmatprep.subr.mxu0 %v7121_v0 }
 0x1c9   : > { %6611 = vmatmul.mubr.msk.f32.vlgmr.msra.gmra.mrb[6].mxu1 %vm325_vm2, %v7393_v2 }
 0x1ca   : > { %6614 = vmatpush3.msk.msra.mxu1 %vm328_vm1, %v4348_v37  ;;  %6615 = vmatprep.mubr.msk.f32.mxu1 %vm7122_vm0, %v7121_v0 }
 0x1cb   : > { %6618 = vmatprep.subr.mxu1 %v7121_v0 }
 0x1cd   : > { %6571 = vmatmul.mubr.msk.f32.vlgmr.msra.gmra.mrb[6].mxu0 %vm325_vm2, %v7489_v16 }
 0x1ce   : > { %6574 = vmatpush3.msk.msra.mxu0 %vm328_vm1, %v7448_v9  ;;  %6575 = vmatprep.mubr.msk.f32.mxu0 %vm7122_vm0, %v7121_v0 }
 0x1cf   : > { %6578 = vmatprep.subr.mxu0 %v7121_v0 }
 0x1d1   : > { %6616 = vmatmul.mubr.msk.f32.vlgmr.msra.gmra.mrb[6].mxu1 %vm325_vm2, %v7489_v16 }
 0x1d2   : > { %6619 = vmatpush3.msk.msra.mxu1 %vm328_vm1, %v7455_v10  ;;  %6620 = vmatprep.mubr.msk.f32.mxu1 %vm7122_vm0, %v7121_v0 }
 0x1d3   : > { %6623 = vmatprep.subr.mxu1 %v7121_v0 }
 0x1d5   : > { %6576 = vmatmul.mubr.msk.f32.vlgmr.msra.gmra.mrb[6].mxu0 %vm325_vm2, %v7515_v20 }
 0x1d6   : > { %6579 = vmatpush3.msk.msra.mxu0 %vm328_vm1, %v4273_v36  ;;  %6580 = vmatprep.mubr.msk.f32.mxu0 %vm7122_vm0, %v7121_v0 }
 0x1d7   : > { %6583 = vmatprep.subr.mxu0 %v7121_v0 }
 0x1d9   : > { %6621 = vmatmul.mubr.msk.f32.vlgmr.msra.gmra.mrb[6].mxu1 %vm325_vm2, %v7515_v20 }
 0x1da   : > { %6624 = vmatpush3.msk.msra.mxu1 %vm328_vm1, %v4951_v38  ;;  %6625 = vmatprep.mubr.msk.f32.mxu1 %vm7122_vm0, %v7121_v0 }
 0x1db   : > { %6628 = vmatprep.subr.mxu1 %v7121_v0 }
 0x1dd   : > { %6581 = vmatmul.mubr.msk.f32.vlgmr.msra.gmra.mrb[6].mxu0 %vm325_vm2, %v7529_v22 }
 0x1de   : > { %6584 = vmatpush3.msk.msra.mxu0 %vm328_vm1, %v4348_v37  ;;  %6585 = vmatprep.mubr.msk.f32.mxu0 %vm7122_vm0, %v7121_v0 }
 0x1df   : > { %6588 = vmatprep.subr.mxu0 %v7121_v0 }
 0x1e1   : > { %6626 = vmatmul.mubr.msk.f32.vlgmr.msra.gmra.mrb[6].mxu1 %vm325_vm2, %v7529_v22 }
 0x1e2   : > { %6629 = vmatpush3.msk.msra.mxu1 %vm328_vm1, %v5026_v39  ;;  %6630 = vmatprep.mubr.msk.f32.mxu1 %vm7122_vm0, %v7121_v0 }
 0x1e3   : > { %6633 = vmatprep.subr.mxu1 %v7121_v0 }
 0x1e5   : > { %6586 = vmatmul.mubr.msk.f32.vlgmr.msra.gmra.mrb[6].mxu0 %vm325_vm2, %v7543_v24 }
 0x1e6   : > { %6589 = vmatpush3.msk.msra.mxu0 %vm328_vm1, %v7455_v10  ;;  %6590 = vmatprep.mubr.msk.f32.mxu0 %vm7122_vm0, %v7121_v0 }
 0x1e7   : > { %6593 = vmatprep.subr.mxu0 %v7121_v0 }
 0x1e9   : > { %6631 = vmatmul.mubr.msk.f32.vlgmr.msra.gmra.mrb[6].mxu1 %vm325_vm2, %v7543_v24 }
 0x1ea   : > { %6634 = vmatpush3.msk.msra.mxu1 %vm328_vm1, %v7494_v17  ;;  %6635 = vmatprep.mubr.msk.f32.mxu1 %vm7122_vm0, %v7121_v0 }
 0x1eb   : > { %6638 = vmatprep.subr.mxu1 %v7121_v0 }
 0x1ed   : > { %6591 = vmatmul.mubr.msk.f32.vlgmr.msra.gmra.mrb[6].mxu0 %vm325_vm2, %v7559_v25 }
 0x1ee   : > { %6594 = vmatpush3.msk.msra.mxu0 %vm328_vm1, %v4951_v38  ;;  %6595 = vmatprep.mubr.msk.f32.mxu0 %vm7122_vm0, %v7121_v0 }
 0x1ef   : > { %6598 = vmatprep.subr.mxu0 %v7121_v0 }
 0x1f1   : > { %6636 = vmatmul.mubr.msk.f32.vlgmr.msra.gmra.mrb[6].mxu1 %vm325_vm2, %v7559_v25 }
 0x1f2   : > { %6639 = vmatpush3.msk.msra.mxu1 %vm328_vm1, %v5629_v40  ;;  %6640 = vmatprep.mubr.msk.f32.mxu1 %vm7122_vm0, %v7121_v0 }
 0x1f3   : > { %6643 = vmatprep.subr.mxu1 %v7121_v0 }
 0x1f5   : > { %6596 = vmatmul.mubr.msk.f32.vlgmr.msra.gmra.mrb[6].mxu0 %vm325_vm2, %v7573_v27 }
 0x1f6   : > { %6599 = vmatpush3.msk.msra.mxu0 %vm328_vm1, %v5026_v39  ;;  %6600 = vmatprep.mubr.msk.f32.mxu0 %vm7122_vm0, %v7121_v0 }
 0x1f9   : > { %6641 = vmatmul.mubr.msk.f32.vlgmr.msra.gmra.mrb[6].mxu1 %vm325_vm2, %v7573_v27 }
 0x1fa   : > { %6644 = vmatpush3.msk.msra.mxu1 %vm328_vm1, %v5704_v41  ;;  %6645 = vmatprep.mubr.msk.f32.mxu1 %vm7122_vm0, %v7121_v0 }
 0x1fd   : > { %6601 = vmatmul.mubr.msk.f32.vlgmr.msra.gmra.mrb[6].mxu0 %vm325_vm2, %v7587_v29 }
 0x201   : > { %6646 = vmatmul.mubr.msk.f32.vlgmr.msra.gmra.mrb[6].mxu1 %vm325_vm2, %v7587_v29 }
 0x204   : > { %v1021_v44 = vpop.f32.mrb[0].mxu0 }
 0x205   : > { %v1034_v45 = vadd.f32 %v7939_v43, %v1021_v44  ;;  %v6332_v46 = vpop.f32.mrb[1].mxu0  ;;  %v1031_v47 = vadd.f32 %v7934_v42, %v1021_v44 }
 0x207   : > { %v1036_v48 = vrot.slane %v1034_v45, 4 }
 0x208   : > { %v1705_v49 = vpop.f32.mrb[0].mxu1 }
 0x209   : > { %v1038_v50 = vadd.f32 %v1036_v48, %v1031_v47  ;;  %v1711_v51 = vadd.f32 %v1705_v49, %v7939_v43  ;;  %v6377_v52 = vpop.f32.mrb[1].mxu1  ;;  %1045 = vrot.lane.b32.xlu1 %v1036_v48, %s7134_s8  ;;  %v1710_v54 = vadd.f32 %v1705_v49, %v7934_v42  ;;  %v1049_v62 = vsub.f32 %v1031_v47, %v1036_v48 }
 0x20b   : > { %v5987_v53 = vmul.f32 -1.442695, %v1038_v50  ;;  %v1713_v55 = vrot.slane %v1711_v51, 4 }
 0x20d   : > { %6896 = vpow2.f32 %v5987_v53  ;;  %v1715_v56 = vadd.f32 %v1713_v55, %v1710_v54  ;;  %1723 = vrot.lane.b32.xlu1 %v1713_v55, %s7134_s8  ;;  %v1727_v1 = vsub.f32 %v1710_v54, %v1713_v55 }
 0x20f   : > { %v6006_v57 = vmul.f32 -1.442695, %v1715_v56 }
 0x211   : > { %6898 = vpow2.f32 %v6006_v57 }
 0x217   : > { %v6897_v58 = vpop.eup %6896 }
 0x218   : > { %v1042_v59 = vadd.f32 1.0, %v6897_v58 }
 0x21a   : > { %6900 = vrcp.f32 %v1042_v59 }
 0x21b   : > { %v6899_v60 = vpop.eup %6898 }
 0x21c   : > { %v1719_v61 = vadd.f32 1.0, %v6899_v60 }
 0x21e   : > { %6902 = vrcp.f32 %v1719_v61 }
 0x224   : > { %v6901_v63 = vpop.eup %6900 }
 0x225   : > { %v1050_v0 = vmul.f32 %v6901_v63, %v1049_v62 }
 0x227   : > { %1052 = vrot.lane.b32.xlu0 %v1050_v0, %s7134_s8 }
 0x228   : > { %v6903_v2 = vpop.eup %6902 }
 0x229   : > { %v1728_v4 = vmul.f32 %v6903_v2, %v1727_v1 }
 0x22b   : > { %1730 = vrot.lane.b32.xlu1 %v1728_v4, %s7134_s8 }
 0x248   : > { %v2383_v5 = vpop.f32.mrb[2].mxu0 }
 0x249   : > { %v2389_v6 = vadd.f32 %v2383_v5, %v7939_v43  ;;  %v6422_v7 = vpop.f32.mrb[3].mxu0  ;;  %v2388_v8 = vadd.f32 %v2383_v5, %v7934_v42 }
 0x24b   : > { %v2391_v9 = vrot.slane %v2389_v6, 4 }
 0x24c   : > { %v3061_v10 = vpop.f32.mrb[2].mxu1 }
 0x24d   : > { %v2393_v11 = vadd.f32 %v2391_v9, %v2388_v8  ;;  %v3067_v12 = vadd.f32 %v3061_v10, %v7939_v43  ;;  %v6467_v13 = vpop.f32.mrb[3].mxu1  ;;  %2401 = vrot.lane.b32.xlu0 %v2391_v9, %s7134_s8  ;;  %v3066_v15 = vadd.f32 %v3061_v10, %v7934_v42  ;;  %v2405_v23 = vsub.f32 %v2388_v8, %v2391_v9 }
 0x24f   : > { %v6027_v14 = vmul.f32 -1.442695, %v2393_v11  ;;  %v3069_v16 = vrot.slane %v3067_v12, 4 }
 0x251   : > { %6904 = vpow2.f32 %v6027_v14  ;;  %v3071_v17 = vadd.f32 %v3069_v16, %v3066_v15  ;;  %3079 = vrot.lane.b32.xlu1 %v3069_v16, %s7134_s8  ;;  %v3083_v26 = vsub.f32 %v3066_v15, %v3069_v16 }
 0x253   : > { %v6048_v18 = vmul.f32 -1.442695, %v3071_v17 }
 0x255   : > { %6906 = vpow2.f32 %v6048_v18 }
 0x25b   : > { %v6905_v19 = vpop.eup %6904 }
 0x25c   : > { %v2397_v20 = vadd.f32 1.0, %v6905_v19  ;;  %v6007_v19 = vld [vmem:[%s7370_s18 + $0x8] sm:$0xf] }
 0x25e   : > { %6908 = vrcp.f32 %v2397_v20  ;;  %v6028_v20 = vld [vmem:[%s7370_s18 + $0xc] sm:$0xf] }
 0x25f   : > { %v6907_v21 = vpop.eup %6906 }
 0x260   : > { %v3075_v22 = vadd.f32 1.0, %v6907_v21 }
 0x262   : > { %6910 = vrcp.f32 %v3075_v22 }
 0x268   : > { %v6909_v24 = vpop.eup %6908 }
 0x269   : > { %v2406_v25 = vmul.f32 %v6909_v24, %v2405_v23 }
 0x26b   : > { %2408 = vrot.lane.b32.xlu0 %v2406_v25, %s7134_s8 }
 0x26c   : > { %v6911_v27 = vpop.eup %6910 }
 0x26d   : > { %v3084_v28 = vmul.f32 %v6911_v27, %v3083_v26  ;;  %v6049_v27 = vld [vmem:[%s7370_s18 + $0x10] sm:$0xf] }
 0x26f   : > { %3086 = vrot.lane.b32.xlu1 %v3084_v28, %s7134_s8 }
 0x28c   : > { %v3739_v29 = vpop.f32.mrb[4].mxu0 }
 0x28d   : > { %v3745_v30 = vadd.f32 %v3739_v29, %v7939_v43  ;;  %v6512_v31 = vpop.f32.mrb[5].mxu0  ;;  %v3744_v32 = vadd.f32 %v3739_v29, %v7934_v42 }
 0x28f   : > { %v3747_v33 = vrot.slane %v3745_v30, 4 }
 0x290   : > { %v4417_v34 = vpop.f32.mrb[4].mxu1 }
 0x291   : > { %v3749_v35 = vadd.f32 %v3747_v33, %v3744_v32  ;;  %v4423_v36 = vadd.f32 %v4417_v34, %v7939_v43  ;;  %v6557_v37 = vpop.f32.mrb[5].mxu1  ;;  %3757 = vrot.lane.b32.xlu0 %v3747_v33, %s7134_s8  ;;  %v4422_v39 = vadd.f32 %v4417_v34, %v7934_v42  ;;  %v3761_v49 = vsub.f32 %v3744_v32, %v3747_v33  ;;  %v6070_v32 = vld [vmem:[%s7370_s18 + $0x14] sm:$0xf] }
 0x293   : > { %v6069_v38 = vmul.f32 -1.442695, %v3749_v35  ;;  %v4425_v40 = vrot.slane %v4423_v36, 4  ;;  %v6091_v35 = vld [vmem:[%s7370_s18 + $0x18] sm:$0xf] }
 0x295   : > { %6912 = vpow2.f32 %v6069_v38  ;;  %v4427_v41 = vadd.f32 %v4425_v40, %v4422_v39  ;;  %4435 = vrot.lane.b32.xlu1 %v4425_v40, %s7134_s8  ;;  %v4439_v52 = vsub.f32 %v4422_v39, %v4425_v40 }
 0x297   : > { %v6090_v44 = vmul.f32 -1.442695, %v4427_v41 }
 0x299   : > { %6914 = vpow2.f32 %v6090_v44  ;;  %v1053_v11 = vpop.permute.xlu0 %1052  ;;  %v6112_v44 = vld [vmem:[%s7370_s18 + $0x1c] sm:$0xf]  ;;  %s6135_s18 = sshll.u32 %s7097_s21, 3  ;;  %s5809_s21 = scalar_lea.sflag [#allocation4], %s7364_s30 }
 0x29f   : > { %v6913_v45 = vpop.eup %6912 }
 0x2a0   : > { %v3753_v46 = vadd.f32 1.0, %v6913_v45 }
 0x2a2   : > { %6916 = vrcp.f32 %v3753_v46 }
 0x2a3   : > { %v6915_v47 = vpop.eup %6914 }
 0x2a4   : > { %v4431_v48 = vadd.f32 1.0, %v6915_v47  ;;  %v5790_v47 = vld [vmem:[%s7377_s13] sm:$0xf]  ;;  %s6136_s13 = sshll.u32 %s8105_s10, 4 }
 0x2a5   : > { %s5821_s20 = sadd.s32 %s6136_s13, %s6135_s18 }
 0x2a6   : > { %6918 = vrcp.f32 %v4431_v48  ;;  %s6137_s29 = sshll.u32 %s5821_s20, 6 }
 0x2a7   : > { %s8005_s12 = scalar_lea.hbm %s8107_s27, %s6137_s29 }
 0x2ac   : > { %v6917_v50 = vpop.eup %6916 }
 0x2ad   : > { %v3762_v51 = vmul.f32 %v6917_v50, %v3761_v49 }
 0x2af   : > { %3764 = vrot.lane.b32.xlu0 %v3762_v51, %s7134_s8 }
 0x2b0   : > { %v6919_v53 = vpop.eup %6918 }
 0x2b1   : > { %v4440_v54 = vmul.f32 %v6919_v53, %v4439_v52 }
 0x2b3   : > { %4442 = vrot.lane.b32.xlu1 %v4440_v54, %s7134_s8 }
 0x2bf   : > { %v2402_v15 = vpop.permute.xlu0 %2401 }
 0x2c0   : > { %v2404_v26 = vadd.f32 %v6028_v20, %v2402_v15 }
 0x2d0   : > { %v5095_v55 = vpop.f32.mrb[6].mxu0 }
 0x2d1   : > { %v5101_v56 = vadd.f32 %v5095_v55, %v7939_v43  ;;  %v6602_v57 = vpop.f32.mrb[7].mxu0  ;;  %v5100_v58 = vadd.f32 %v5095_v55, %v7934_v42 }
 0x2d3   : > { %v5103_v59 = vrot.slane %v5101_v56, 4 }
 0x2d4   : > { %v5773_v60 = vpop.f32.mrb[6].mxu1 }
 0x2d5   : > { %v5105_v61 = vadd.f32 %v5103_v59, %v5100_v58  ;;  %v5779_v62 = vadd.f32 %v5773_v60, %v7939_v43  ;;  %v6647_v63 = vpop.f32.mrb[7].mxu1  ;;  %5113 = vrot.lane.b32.xlu0 %v5103_v59, %s7134_s8  ;;  %v5778_v1 = vadd.f32 %v5773_v60, %v7934_v42  ;;  %v1046_v43 = vpop.permute.xlu1 %1045  ;;  %v5117_v12 = vsub.f32 %v5100_v58, %v5103_v59 }
 0x2d6   : > { %v1048_v16 = vadd.f32 %v7398_v3, %v1046_v43 }
 0x2d7   : > { %v6111_v0 = vmul.f32 -1.442695, %v5105_v61  ;;  %v5781_v2 = vrot.slane %v5779_v62, 4 }
 0x2d8   : > { %v1055_v21 = vadd.f32 %v1053_v11, %v1048_v16 }
 0x2d9   : > { %6920 = vpow2.f32 %v6111_v0  ;;  %v5783_v4 = vadd.f32 %v5781_v2, %v5778_v1  ;;  %5791 = vrot.lane.b32.xlu1 %v5781_v2, %s7134_s8  ;;  %v1724_v10 = vpop.permute.xlu1 %1723  ;;  %v5795_v17 = vsub.f32 %v5778_v1, %v5781_v2 }
 0x2da   : > { %v1726_v25 = vadd.f32 %v6007_v19, %v1724_v10 }
 0x2db   : > { %v6132_v5 = vmul.f32 -1.442695, %v5783_v4 }
 0x2dd   : > { %6922 = vpow2.f32 %v6132_v5  ;;  %v1731_v14 = vpop.permute.xlu1 %1730  ;;  %v2409_v24 = vpop.permute.xlu0 %2408 }
 0x2de   : > { %v1733_v3 = vadd.f32 %v1731_v14, %v1726_v25  ;;  %v2411_v28 = vadd.f32 %v2409_v24, %v2404_v26 }
 0x2e1   : > { %v3080_v23 = vpop.permute.xlu1 %3079 }
 0x2e2   : > { %v3082_v30 = vadd.f32 %v6049_v27, %v3080_v23 }
 0x2e3   : > { %v6921_v6 = vpop.eup %6920 }
 0x2e4   : > { %v5109_v7 = vadd.f32 1.0, %v6921_v6 }
 0x2e5   : > { %v3087_v29 = vpop.permute.xlu1 %3086 }
 0x2e6   : > { %6924 = vrcp.f32 %v5109_v7  ;;  %v3089_v31 = vadd.f32 %v3087_v29, %v3082_v30 }
 0x2e7   : > { %v6923_v8 = vpop.eup %6922 }
 0x2e8   : > { %v5787_v9 = vadd.f32 1.0, %v6923_v8 }
 0x2ea   : > { %6926 = vrcp.f32 %v5787_v9 }
 0x2f0   : > { %v6925_v42 = vpop.eup %6924 }
 0x2f1   : > { %v5118_v13 = vmul.f32 %v6925_v42, %v5117_v12 }
 0x2f3   : > { %5120 = vrot.lane.b32.xlu0 %v5118_v13, %s7134_s8 }
 0x2f4   : > { %v6927_v18 = vpop.eup %6926 }
 0x2f5   : > { %v5796_v22 = vmul.f32 %v6927_v18, %v5795_v17 }
 0x2f7   : > { %5798 = vrot.lane.b32.xlu1 %v5796_v22, %s7134_s8  ;;  %1057 = vrot.lane.b32.xlu0 %v1055_v21, %s7123_s5 }
 0x2fb   : > { %1735 = vrot.lane.b32.xlu1 %v1733_v3, %s7123_s5  ;;  %2413 = vrot.lane.b32.xlu0 %v2411_v28, %s7123_s5 }
 0x2ff   : > { %3091 = vrot.lane.b32.xlu1 %v3089_v31, %s7123_s5 }
 0x303   : > { %v3758_v33 = vpop.permute.xlu0 %3757 }
 0x304   : > { %v3760_v34 = vadd.f32 %v6070_v32, %v3758_v33 }
 0x307   : > { %v4436_v36 = vpop.permute.xlu1 %4435 }
 0x308   : > { %v4438_v39 = vadd.f32 %v6091_v35, %v4436_v36 }
 0x321   : > { %v3765_v37 = vpop.permute.xlu0 %3764 }
 0x322   : > { %v3767_v38 = vadd.f32 %v3765_v37, %v3760_v34 }
 0x324   : > { %3769 = vrot.lane.b32.xlu0 %v3767_v38, %s7123_s5 }
 0x325   : > { %v4443_v40 = vpop.permute.xlu1 %4442 }
 0x326   : > { %v4445_v41 = vadd.f32 %v4443_v40, %v4438_v39 }
 0x328   : > { %4447 = vrot.lane.b32.xlu1 %v4445_v41, %s7123_s5 }
 0x347   : > { %v5114_v45 = vpop.permute.xlu0 %5113 }
 0x348   : > { %v5116_v46 = vadd.f32 %v6112_v44, %v5114_v45 }
 0x34b   : > { %v5792_v48 = vpop.permute.xlu1 %5791 }
 0x34c   : > { %v5794_v51 = vadd.f32 %v5792_v48, %v5790_v47 }
 0x365   : > { %v5121_v49 = vpop.permute.xlu0 %5120 }
 0x366   : > { %v5123_v50 = vadd.f32 %v5121_v49, %v5116_v46 }
 0x368   : > { %5125 = vrot.lane.b32.xlu0 %v5123_v50, %s7123_s5 }
 0x369   : > { %v5799_v52 = vpop.permute.xlu1 %5798  ;;  %v1058_v53 = vpop.permute.xlu0 %1057 }
 0x36a   : > { %v5801_v54 = vadd.f32 %v5799_v52, %v5794_v51  ;;  %1061 = vst.msk [vmem:[%s289_s9] sm:$0xf] %vm1060_vm3, %v1058_v53 }
 0x36c   : > { %5803 = vrot.lane.b32.xlu1 %v5801_v54, %s7123_s5  ;;  %s5824_s5 = sshll.u32 %s289_s9, 4  ;;  %s7999_s5 = int_to_ptr.vmem [resolvable:$true] %s5824_s5 }
 0x36d   : > { %v1736_v55 = vpop.permute.xlu1 %1735  ;;  %v2414_v56 = vpop.permute.xlu0 %2413  ;;  %s6985_s14 = scalar_lea.vmem %s7999_s5, 512  ;;  %p6992_p8 = scmp.lt.s32.totalorder %s7999_s5, %s6990_s26 }
 0x36e   : > { %6008 = vst.msk [vmem:[%s289_s9 + $0x4] sm:$0xf] %vm1060_vm3, %v1736_v55  ;;  %6029 = vst.msk [vmem:[%s289_s9 + $0x8] sm:$0xf] %vm1060_vm3, %v2414_v56  ;;  %p6986_p7 = scmp.ne.s32.totalorder %s7999_s5, %s6985_s14  ;;  %p6993_p2 = scmp.lt.s32.totalorder %s6991_s22, %s6985_s14 }
 0x370   : > { %p6987_p11 = pnand %p6986_p7, %p8108_p10  ;;  %p6994_p0 = por %p6993_p2, %p6992_p8 }
 0x371   : > { %v3092_v57 = vpop.permute.xlu1 %3091 }
 0x372   : > { %6050 = vst.msk [vmem:[%s289_s9 + $0xc] sm:$0xf] %vm1060_vm3, %v3092_v57  ;;  %p6988_p12 = pneg %p6987_p11 }
 0x374   : > { %p6995_p4 = pnand %p6994_p0, %p6988_p12 }
 0x396   : > { %v3770_v58 = vpop.permute.xlu0 %3769 }
 0x397   : > { %6071 = vst.msk [vmem:[%s289_s9 + $0x10] sm:$0xf] %vm1060_vm3, %v3770_v58 }
 0x39a   : > { %v4448_v59 = vpop.permute.xlu1 %4447 }
 0x39b   : > { %6092 = vst.msk [vmem:[%s289_s9 + $0x14] sm:$0xf] %vm1060_vm3, %v4448_v59 }
 0x3da   : > { %v5126_v60 = vpop.permute.xlu0 %5125 }
 0x3db   : > { %6113 = vst.msk [vmem:[%s289_s9 + $0x18] sm:$0xf] %vm1060_vm3, %v5126_v60 }
 0x3de   : > { %v5804_v61 = vpop.permute.xlu1 %5803 }
 0x3df   : > { %6133 = vst.msk [vmem:[%s289_s9 + $0x1c] sm:$0xf] %vm1060_vm3, %v5804_v61 }
 0x3e0   : > { %6998 = shalt.err (!%p6995_p4)
}
 0x3e1   : > { %s6999_s6 = scalar_lea.hbm %s8005_s12, 512  ;;  %s7003_s10 = scalar_lea.hbm %s8107_s27, 2048 }
 0x3e2   : > { %p7000_p1 = scmp.ne.s32.totalorder %s8005_s12, %s6999_s6  ;;  %p7004_p5 = scmp.lt.u32.totalorder %s8005_s12, %s8107_s27 }
 0x3e3   : > { %p7005_p6 = scmp.lt.u32.totalorder %s7003_s10, %s6999_s6  ;;  %p7007_p7 = scmp.lt.u32.totalorder %s6999_s6, %s8005_s12 }
 0x3e4   : > { %p7001_p3 = pnand %p7000_p1, %p8108_p10 }
 0x3e5   : > { %p7006_p13 = por %p7005_p6, %p7004_p5 }
 0x3e6   : > { %p7002_p9 = pneg %p7001_p3 }
 0x3e7   : > { %p7008_p11 = por %p7007_p7, %p7006_p13 }
 0x3e9   : > { %p7009_p12 = pnand %p7008_p11, %p7002_p9 }
 0x3eb   : > { %7012 = shalt.err (!%p7009_p12)
}
 0x3ec   : > { %s7136_s13 = smov 64   ;;  %s7137_s20 = smov 4  }
 0x3ed   : > { %6780 = dma.vmem_to_hbm [thread:$0]  (%p8108_p10), %s7999_s5, 512, %s8005_s12, %s5809_s21, %s7136_s13, %s7136_s13, %s7137_s20  }
 0x3ee PF: > { %s8109_s29 = sld [smem:[#allocation11_spill]]  ;;  %s8110_s4 = sld [smem:[#allocation19_spill]] }
 0x3ef   : > { %p6786_p8 = scmp.ge.s32.totalorder %s7113_s25, 2 }
 0x3f4   : > { %s5839_s11 = sand.u32 1, %s8109_s29   ;;  %p8111_p2 = scmp.ne.s32.totalorder %s8110_s4, 0 }
 0x3f5   : > { %s5840_s14 = scalar_lea.sflag [#allocation4], %s5839_s11 }
 0x3f6   : > { %p6783_p0 = pnand %p6786_p8, %p8111_p2 }
 0x3f8   : > { %7066 = dma.done.wait (!%p6783_p0), %s5840_s14, 512  }
 0x3f9   : > { %7068 = vsyncadd (!%p6783_p0), %s5840_s14, 4294966784  ;;  %s23_s25 = sadd.s32 1, %s7113_s25   ;;  %s8112_s26 = sld [smem:[#allocation17_spill]] }
 0x3fa   : > { %p20_p4 = scmp.ge.s32.totalorder %s23_s25, 6   ;;  %s8113_s30 = sld [smem:[#allocation12_spill]] }
 0x3fb   : > { %s8114_s20 = sld [smem:[#allocation16_spill]]  ;;  %s8115_s7 = sld [smem:[#allocation14_spill]] }
 0x3fc   : > { %s8116_s5 = sld [smem:[#allocation15_spill]]  ;;  %s8117_s15 = smov %s7077_s16 }
 0x3fd   : > { %s8118_s16 = smov %s7081_s17  ;;  %s8120_s18 = smov %s7089_s19 }
 0x3fe   : > { %s8122_s21 = smov %s7105_s23  ;;  %s8123_s22 = smov %s7109_s24 }
 0x3ff   : > { %s8119_s17 = smov %s8112_s26  ;;  %22 = sbr.rel (!%p20_p4) target bundleno = 13 (0xd), region = 109 }
 0x400   : > { %s8121_s19 = smov %s8113_s30 }
 0x401   : > { %s8124_s23 = smov %s8115_s7 }
 0x402   : > { %s8125_s24 = smov %s8116_s5 }
 0x406   :  { %5845 = vsyncpa [#allocation3], 1 }
 0x407   :  { %5847 = vsyncpa [#allocation3 + $0x1], 1 }
 0x408   :  { %5848 = vsyncpa [#allocation6], 1 }
 0x409   :  { %5850 = vsyncpa [#allocation6 + $0x1], 1 }
 0x40a   :  { %5851 = vsyncpa [#allocation4], 1 }
 0x40b   :  { %5853 = vsyncpa [#allocation4 + $0x1], 1 }

</bundles_post_ra>
